<compile_context>
chip_gen: v6e
topology: v6e:2x2x1
jax: 0.10.0
libtpu: 0.0.40
codegen_flags: <defaults>
</compile_context>

<pallas_src>
from functools import partial

import jax
import jax.numpy as jnp
from jax.experimental import pallas as pl
from jax.experimental.pallas import tpu as pltpu


# ----------------------------- in-kernel helpers -----------------------------

def _erf(x):
    # Abramowitz & Stegun 7.1.26 polynomial erf (max abs error ~1.5e-7 in f32;
    # the approx reciprocal adds ~1e-3 relative, well inside bf16 tolerances).
    a1, a2, a3, a4, a5 = (0.254829592, -0.284496736, 1.421413741,
                          -1.453152027, 1.061405429)
    p = 0.3275911
    ax = jnp.abs(x)
    t = pl.reciprocal(1.0 + p * ax, approx=True)          # EUP slot
    poly = ((((a5 * t + a4) * t + a3) * t + a2) * t + a1) * t
    y = 1.0 - poly * jnp.exp(-ax * ax)
    return jnp.where(x >= 0, y, -y)


def _gelu_exact(x):
    # Matches PyTorch nn.GELU() (erf form).
    return 0.5 * x * (1.0 + _erf(x * 0.7071067811865476))


def _layernorm(x, gamma, beta, eps):
    mean = jnp.mean(x, axis=-1, keepdims=True)
    xc = x - mean
    var = jnp.mean(xc * xc, axis=-1, keepdims=True)
    return xc * jax.lax.rsqrt(var + eps) * gamma + beta


# --------------------------------- kernel ------------------------------------

def _block_kernel(x_ref,
                  g1_ref, b1_ref,
                  wq_ref, bq_ref, wk_ref, bk_ref, wv_ref, bv_ref,
                  wproj_ref, bproj_ref,
                  g2_ref, b2_ref,
                  wfc1_ref, bfc1_ref, wfc2_ref, bfc2_ref,
                  out_ref,
                  *, num_heads, head_dim, eps, n_valid):
    f32 = jnp.float32
    x = x_ref[0].astype(f32)                              # (Np, C)
    Np = x.shape[0]
    C = num_heads * head_dim
    cdt = wq_ref.dtype                                    # compute dtype (bf16)

    # ---- Sub-block 1: y = x + Attention(LN1(x)) ----
    h = _layernorm(x, g1_ref[...], b1_ref[...], eps).astype(cdt)
    # 1/sqrt(head_dim) is pre-folded into wq / bq in the wrapper.
    q = jnp.dot(h, wq_ref[...], preferred_element_type=f32) + bq_ref[...]
    k = jnp.dot(h, wk_ref[...], preferred_element_type=f32) + bk_ref[...]
    v = jnp.dot(h, wv_ref[...], preferred_element_type=f32) + bv_ref[...]

    # (Np, C) -> (heads, Np, head_dim); layout-aware relayout, paid once.
    q3 = pltpu.einshape("nhd->hnd", q.astype(cdt).reshape(Np, num_heads, head_dim))
    k3 = pltpu.einshape("nhd->hnd", k.astype(cdt).reshape(Np, num_heads, head_dim))
    v3 = pltpu.einshape("nhd->hnd", v.astype(cdt).reshape(Np, num_heads, head_dim))

    # Batched attention over heads on the MXU, f32 accumulation.
    s = jnp.einsum("hqd,hkd->hqk", q3, k3, preferred_element_type=f32)   # (H,Np,Np)
    if n_valid < Np:                     # mask padded key positions (static guard)
        key_idx = jax.lax.broadcasted_iota(jnp.int32, (1, 1, Np), 2)
        s = s + jnp.where(key_idx < n_valid, 0.0, -1e30)
    s = s - jnp.max(s, axis=-1, keepdims=True)
    p = jnp.exp(s)
    p = p * pl.reciprocal(jnp.sum(p, axis=-1, keepdims=True), approx=True)

    av = jnp.einsum("hqk,hkd->hqd", p.astype(cdt), v3, preferred_element_type=f32)
    merged = pltpu.einshape("hnd->nhd", av).reshape(Np, C).astype(cdt)   # (Np, C)
    attn_out = (jnp.dot(merged, wproj_ref[...], preferred_element_type=f32)
                + bproj_ref[...])
    y = x + attn_out

    # ---- Sub-block 2: out = y + MLP(LN2(y)) ----
    h2 = _layernorm(y, g2_ref[...], b2_ref[...], eps).astype(cdt)
    f = jnp.dot(h2, wfc1_ref[...], preferred_element_type=f32) + bfc1_ref[...]
    f = _gelu_exact(f).astype(cdt)
    f = jnp.dot(f, wfc2_ref[...], preferred_element_type=f32) + bfc2_ref[...]
    out_ref[0] = (y + f).astype(out_ref.dtype)


# --------------------------------- wrapper -----------------------------------

def vit_block(x, params, num_heads, eps=1e-5, compute_dtype=jnp.bfloat16):
    """
    Fused ViT Block forward.  x: (B, N, C).  `params` holds PyTorch-layout tensors:
      ln1_w/ln1_b: (C,), qkv_w: (3C, C), qkv_b: (3C,), proj_w: (C, C), proj_b: (C,),
      ln2_w/ln2_b: (C,), fc1_w: (H, C), fc1_b: (H,), fc2_w: (C, H), fc2_b: (C,)
    Dropout / DropPath are identity (eval mode / 0.0 ratios).
    """
    B, N, C = x.shape
    assert C % num_heads == 0
    head_dim = C // num_heads
    scale = float(head_dim) ** -0.5
    H = params["fc1_w"].shape[0]
    f32 = jnp.float32
    cdt = compute_dtype

    # Pad sequence length to a sublane multiple; padded keys masked in-kernel.
    N_pad = ((N + 7) // 8) * 8
    x_in = x if N_pad == N else jnp.pad(x, ((0, 0), (0, N_pad - N), (0, 0)))

    # One-time layout prep: split qkv into q/k/v, pre-transpose Linear weights to
    # (in, out), fold the attention scale into q, cast matmul weights to the
    # compute dtype, keep biases / LN params f32.  Constant-folded under jit.
    qkv_w = params["qkv_w"].astype(f32)            # (3C, C), rows = [q | k | v]
    qkv_b = params["qkv_b"].astype(f32)            # (3C,)
    wq = (qkv_w[:C].T * scale).astype(cdt)         # (C, C), scale folded in
    wk = qkv_w[C:2 * C].T.astype(cdt)
    wv = qkv_w[2 * C:].T.astype(cdt)
    bq = (qkv_b[:C] * scale).reshape(1, C).astype(f32)
    bk = qkv_b[C:2 * C].reshape(1, C).astype(f32)
    bv = qkv_b[2 * C:].reshape(1, C).astype(f32)
    wproj = params["proj_w"].T.astype(cdt)         # (C, C)
    bproj = params["proj_b"].reshape(1, C).astype(f32)
    wfc1 = params["fc1_w"].T.astype(cdt)           # (C, H)
    bfc1 = params["fc1_b"].reshape(1, H).astype(f32)
    wfc2 = params["fc2_w"].T.astype(cdt)           # (H, C)
    bfc2 = params["fc2_b"].reshape(1, C).astype(f32)
    g1 = params["ln1_w"].reshape(1, C).astype(f32)
    b1 = params["ln1_b"].reshape(1, C).astype(f32)
    g2 = params["ln2_w"].reshape(1, C).astype(f32)
    b2 = params["ln2_b"].reshape(1, C).astype(f32)

    kernel = partial(_block_kernel, num_heads=num_heads, head_dim=head_dim,
                     eps=eps, n_valid=N)

    const = lambda b: (0, 0)   # grid-invariant -> stays VMEM resident
    wspec = lambda shp: pl.BlockSpec(shp, const, pipeline_mode=pl.Buffered(1))

    # VMEM budget: single-buffered compute-dtype weights + double-buffered
    # activation tiles + f32 intermediates, with ~50% headroom.
    cb = jnp.dtype(cdt).itemsize
    xb = jnp.dtype(x.dtype).itemsize
    weight_bytes = cb * (4 * C * C + 2 * C * H)
    small_bytes = 4 * (8 * C + H)
    act_bytes = 2 * 2 * N_pad * C * xb
    inter_bytes = 4 * (8 * N_pad * C + 2 * N_pad * H
                       + 3 * num_heads * N_pad * N_pad
                       + 4 * num_heads * N_pad * head_dim)
    vmem_limit = int(1.5 * (weight_bytes + small_bytes + act_bytes + inter_bytes))
    vmem_limit = min(max(vmem_limit, 16 * 1024 * 1024), 96 * 1024 * 1024)

    flops = (2 * B * N_pad * C * (4 * C + 2 * H)
             + 4 * B * num_heads * N_pad * N_pad * head_dim)
    transcendentals = B * (num_heads * N_pad * N_pad + N_pad * H + 2 * N_pad)
    bytes_accessed = 2 * B * N_pad * C * xb + weight_bytes + small_bytes

    out = pl.pallas_call(
        kernel,
        out_shape=jax.ShapeDtypeStruct((B, N_pad, C), x.dtype),
        grid_spec=pltpu.PrefetchScalarGridSpec(
            num_scalar_prefetch=0,
            grid=(B,),
            in_specs=[
                pl.BlockSpec((1, N_pad, C), lambda b: (b, 0, 0)),   # x (pipelined over B)
                wspec((1, C)), wspec((1, C)),                       # ln1 gamma / beta
                wspec((C, C)), wspec((1, C)),                       # wq, bq (scale folded)
                wspec((C, C)), wspec((1, C)),                       # wk, bk
                wspec((C, C)), wspec((1, C)),                       # wv, bv
                wspec((C, C)), wspec((1, C)),                       # proj w, b
                wspec((1, C)), wspec((1, C)),                       # ln2 gamma / beta
                wspec((C, H)), wspec((1, H)),                       # fc1 w, b
                wspec((H, C)), wspec((1, C)),                       # fc2 w, b
            ],
            out_specs=pl.BlockSpec((1, N_pad, C), lambda b: (b, 0, 0)),
        ),
        compiler_params=pltpu.CompilerParams(
            dimension_semantics=("parallel",),
            vmem_limit_bytes=vmem_limit),
        cost_estimate=pl.CostEstimate(flops=flops,
                                      transcendentals=transcendentals,
                                      bytes_accessed=bytes_accessed),
    )(x_in, g1, b1, wq, bq, wk, bk, wv, bv, wproj, bproj,
      g2, b2, wfc1, bfc1, wfc2, bfc2)

    return out if N_pad == N else out[:, :N, :]


# ----------------------------------- demo ------------------------------------

if __name__ == "__main__":
    B, N, C = 2, 8, 32          # batch, sequence length, embed dim
    num_heads = 4               # head_dim = 8
    H = int(C * 4.0)            # mlp hidden = 128

    key = jax.random.PRNGKey(0)
    ks = jax.random.split(key, 12)
    f32 = jnp.float32
    x = jax.random.normal(ks[0], (B, N, C), dtype=f32)
    params = {
        "ln1_w": 1.0 + 0.1 * jax.random.normal(ks[1], (C,), dtype=f32),
        "ln1_b": 0.1 * jax.random.normal(ks[2], (C,), dtype=f32),
        "qkv_w": 0.02 * jax.random.normal(ks[3], (3 * C, C), dtype=f32),
        "qkv_b": jnp.zeros((3 * C,), dtype=f32),   # qkv_bias=False (module default)
        "proj_w": 0.02 * jax.random.normal(ks[4], (C, C), dtype=f32),
        "proj_b": 0.02 * jax.random.normal(ks[5], (C,), dtype=f32),
        "ln2_w": 1.0 + 0.1 * jax.random.normal(ks[6], (C,), dtype=f32),
        "ln2_b": 0.1 * jax.random.normal(ks[7], (C,), dtype=f32),
        "fc1_w": 0.02 * jax.random.normal(ks[8], (H, C), dtype=f32),
        "fc1_b": 0.02 * jax.random.normal(ks[9], (H,), dtype=f32),
        "fc2_w": 0.02 * jax.random.normal(ks[10], (C, H), dtype=f32),
        "fc2_b": 0.02 * jax.random.normal(ks[11], (C,), dtype=f32),
    }

    out = vit_block(x, params, num_heads=num_heads)
    out = jax.block_until_ready(out)

    # ---- pure-JAX f32 reference of the PyTorch Block forward (eval mode) ----
    def reference_block(x, p, num_heads, eps=1e-5):
        Bq, Nq, Cq = x.shape
        hd = Cq // num_heads
        scale = hd ** -0.5

        def ln(z, g, b):
            m = z.mean(-1, keepdims=True)
            v = ((z - m) ** 2).mean(-1, keepdims=True)
            return (z - m) / jnp.sqrt(v + eps) * g + b

        h = ln(x, p["ln1_w"], p["ln1_b"])
        qkv = h @ p["qkv_w"].T + p["qkv_b"]
        qkv = qkv.reshape(Bq, Nq, 3, num_heads, hd).transpose(2, 0, 3, 1, 4)
        q, k, v = qkv[0], qkv[1], qkv[2]                       # (B, H, N, hd)
        attn = (q @ jnp.swapaxes(k, -1, -2)) * scale
        attn = jax.nn.softmax(attn, axis=-1)
        o = (attn @ v).transpose(0, 2, 1, 3).reshape(Bq, Nq, Cq)
        o = o @ p["proj_w"].T + p["proj_b"]
        y = x + o
        h2 = ln(y, p["ln2_w"], p["ln2_b"])
        f = h2 @ p["fc1_w"].T + p["fc1_b"]
        f = 0.5 * f * (1.0 + jax.scipy.special.erf(f * 0.7071067811865476))  # exact GELU
        f = f @ p["fc2_w"].T + p["fc2_b"]
        return y + f

    ref = reference_block(x, params, num_heads)
    assert out.shape == (B, N, C)
    err = jnp.max(jnp.abs(out - ref))
    # bf16 matmul operands with f32 accumulation: allow ~2e-2 tolerance.
    assert jnp.allclose(out, ref, atol=2e-2, rtol=2e-2), f"max abs err {err}"

    print("KERNEL_OK")
</pallas_src>

<mosaic_0001>
module attributes {stable_mosaic.version = 11 : i64} {
  func.func @_block_kernel(%arg0: i32, %arg1: memref<1x8x32xf32, #tpu.memory_space<vmem>>, %arg2: memref<1x32xf32, #tpu.memory_space<vmem>>, %arg3: memref<1x32xf32, #tpu.memory_space<vmem>>, %arg4: memref<32x32xbf16, #tpu.memory_space<vmem>>, %arg5: memref<1x32xf32, #tpu.memory_space<vmem>>, %arg6: memref<32x32xbf16, #tpu.memory_space<vmem>>, %arg7: memref<1x32xf32, #tpu.memory_space<vmem>>, %arg8: memref<32x32xbf16, #tpu.memory_space<vmem>>, %arg9: memref<1x32xf32, #tpu.memory_space<vmem>>, %arg10: memref<32x32xbf16, #tpu.memory_space<vmem>>, %arg11: memref<1x32xf32, #tpu.memory_space<vmem>>, %arg12: memref<1x32xf32, #tpu.memory_space<vmem>>, %arg13: memref<1x32xf32, #tpu.memory_space<vmem>>, %arg14: memref<32x128xbf16, #tpu.memory_space<vmem>>, %arg15: memref<1x128xf32, #tpu.memory_space<vmem>>, %arg16: memref<128x32xbf16, #tpu.memory_space<vmem>>, %arg17: memref<1x32xf32, #tpu.memory_space<vmem>>, %arg18: memref<1x8x32xf32, #tpu.memory_space<vmem>>) attributes {dimension_semantics = [#tpu.dimension_semantics<parallel>], iteration_bounds = array<i64: 2>, scalar_prefetch = 0 : i64, scratch_operands = 0 : i64, tpu.core_type = #tpu.core_type<tc>, window_params = [{transform_indices = @transform_0, window_bounds = array<i64: 1, 8, 32>}, {pipeline_mode = #tpu.pipeline_mode<synchronous>, transform_indices = @transform_1, window_bounds = array<i64: 1, 32>}, {pipeline_mode = #tpu.pipeline_mode<synchronous>, transform_indices = @transform_2, window_bounds = array<i64: 1, 32>}, {pipeline_mode = #tpu.pipeline_mode<synchronous>, transform_indices = @transform_3, window_bounds = array<i64: 32, 32>}, {pipeline_mode = #tpu.pipeline_mode<synchronous>, transform_indices = @transform_4, window_bounds = array<i64: 1, 32>}, {pipeline_mode = #tpu.pipeline_mode<synchronous>, transform_indices = @transform_5, window_bounds = array<i64: 32, 32>}, {pipeline_mode = #tpu.pipeline_mode<synchronous>, transform_indices = @transform_6, window_bounds = array<i64: 1, 32>}, {pipeline_mode = #tpu.pipeline_mode<synchronous>, transform_indices = @transform_7, window_bounds = array<i64: 32, 32>}, {pipeline_mode = #tpu.pipeline_mode<synchronous>, transform_indices = @transform_8, window_bounds = array<i64: 1, 32>}, {pipeline_mode = #tpu.pipeline_mode<synchronous>, transform_indices = @transform_9, window_bounds = array<i64: 32, 32>}, {pipeline_mode = #tpu.pipeline_mode<synchronous>, transform_indices = @transform_10, window_bounds = array<i64: 1, 32>}, {pipeline_mode = #tpu.pipeline_mode<synchronous>, transform_indices = @transform_11, window_bounds = array<i64: 1, 32>}, {pipeline_mode = #tpu.pipeline_mode<synchronous>, transform_indices = @transform_12, window_bounds = array<i64: 1, 32>}, {pipeline_mode = #tpu.pipeline_mode<synchronous>, transform_indices = @transform_13, window_bounds = array<i64: 32, 128>}, {pipeline_mode = #tpu.pipeline_mode<synchronous>, transform_indices = @transform_14, window_bounds = array<i64: 1, 128>}, {pipeline_mode = #tpu.pipeline_mode<synchronous>, transform_indices = @transform_15, window_bounds = array<i64: 128, 32>}, {pipeline_mode = #tpu.pipeline_mode<synchronous>, transform_indices = @transform_16, window_bounds = array<i64: 1, 32>}, {transform_indices = @transform_17, window_bounds = array<i64: 1, 8, 32>}]} {
    %c0 = arith.constant 0 : index
    %c0_0 = arith.constant 0 : index
    %c0_1 = arith.constant 0 : index
    %0 = vector.load %arg1[%c0, %c0_0, %c0_1] : memref<1x8x32xf32, #tpu.memory_space<vmem>>, vector<1x8x32xf32>
    %1 = vector.shape_cast %0 : vector<1x8x32xf32> to vector<8x32xf32>
    %c0_2 = arith.constant 0 : index
    %c0_3 = arith.constant 0 : index
    %2 = vector.load %arg2[%c0_2, %c0_3] : memref<1x32xf32, #tpu.memory_space<vmem>>, vector<1x32xf32>
    %c0_4 = arith.constant 0 : index
    %c0_5 = arith.constant 0 : index
    %3 = vector.load %arg3[%c0_4, %c0_5] : memref<1x32xf32, #tpu.memory_space<vmem>>, vector<1x32xf32>
    %cst = arith.constant dense<0.000000e+00> : vector<8xf32>
    %4 = vector.multi_reduction <add>, %1, %cst [1] : vector<8x32xf32> to vector<8xf32>
    %5 = vector.shape_cast %4 : vector<8xf32> to vector<8x1xf32>
    %cst_6 = arith.constant 3.200000e+01 : f32
    %6 = vector.broadcast %cst_6 : f32 to vector<8x1xf32>
    %7 = arith.divf %5, %6 : vector<8x1xf32>
    %8 = vector.broadcast %7 : vector<8x1xf32> to vector<8x32xf32>
    %9 = arith.subf %1, %8 : vector<8x32xf32>
    %10 = arith.mulf %9, %9 : vector<8x32xf32>
    %cst_7 = arith.constant dense<0.000000e+00> : vector<8xf32>
    %11 = vector.multi_reduction <add>, %10, %cst_7 [1] : vector<8x32xf32> to vector<8xf32>
    %12 = vector.shape_cast %11 : vector<8xf32> to vector<8x1xf32>
    %cst_8 = arith.constant 3.200000e+01 : f32
    %13 = vector.broadcast %cst_8 : f32 to vector<8x1xf32>
    %14 = arith.divf %12, %13 : vector<8x1xf32>
    %cst_9 = arith.constant 9.99999974E-6 : f32
    %15 = vector.broadcast %cst_9 : f32 to vector<8x1xf32>
    %16 = arith.addf %14, %15 : vector<8x1xf32>
    %17 = math.rsqrt %16 : vector<8x1xf32>
    %18 = vector.broadcast %17 : vector<8x1xf32> to vector<8x32xf32>
    %19 = arith.mulf %9, %18 : vector<8x32xf32>
    %20 = vector.broadcast %2 : vector<1x32xf32> to vector<8x32xf32>
    %21 = arith.mulf %19, %20 : vector<8x32xf32>
    %22 = vector.broadcast %3 : vector<1x32xf32> to vector<8x32xf32>
    %23 = arith.addf %21, %22 : vector<8x32xf32>
    %24 = arith.truncf %23 : vector<8x32xf32> to vector<8x32xbf16>
    %c0_10 = arith.constant 0 : index
    %c0_11 = arith.constant 0 : index
    %25 = vector.load %arg4[%c0_10, %c0_11] : memref<32x32xbf16, #tpu.memory_space<vmem>>, vector<32x32xbf16>
    %cst_12 = arith.constant dense<0.000000e+00> : vector<8x32xf32>
    %26 = tpu.matmul %24, %25, %cst_12 {dimension_numbers = #tpu.dot_dimension_numbers<[1], [0], [0], [1], [0, 0, 1, 1], [], []>} : vector<8x32xbf16>, vector<32x32xbf16>, vector<8x32xf32> -> vector<8x32xf32>
    %c0_13 = arith.constant 0 : index
    %c0_14 = arith.constant 0 : index
    %27 = vector.load %arg5[%c0_13, %c0_14] : memref<1x32xf32, #tpu.memory_space<vmem>>, vector<1x32xf32>
    %28 = vector.broadcast %27 : vector<1x32xf32> to vector<8x32xf32>
    %29 = arith.addf %26, %28 : vector<8x32xf32>
    %c0_15 = arith.constant 0 : index
    %c0_16 = arith.constant 0 : index
    %30 = vector.load %arg6[%c0_15, %c0_16] : memref<32x32xbf16, #tpu.memory_space<vmem>>, vector<32x32xbf16>
    %cst_17 = arith.constant dense<0.000000e+00> : vector<8x32xf32>
    %31 = tpu.matmul %24, %30, %cst_17 {dimension_numbers = #tpu.dot_dimension_numbers<[1], [0], [0], [1], [0, 0, 1, 1], [], []>} : vector<8x32xbf16>, vector<32x32xbf16>, vector<8x32xf32> -> vector<8x32xf32>
    %c0_18 = arith.constant 0 : index
    %c0_19 = arith.constant 0 : index
    %32 = vector.load %arg7[%c0_18, %c0_19] : memref<1x32xf32, #tpu.memory_space<vmem>>, vector<1x32xf32>
    %33 = vector.broadcast %32 : vector<1x32xf32> to vector<8x32xf32>
    %34 = arith.addf %31, %33 : vector<8x32xf32>
    %c0_20 = arith.constant 0 : index
    %c0_21 = arith.constant 0 : index
    %35 = vector.load %arg8[%c0_20, %c0_21] : memref<32x32xbf16, #tpu.memory_space<vmem>>, vector<32x32xbf16>
    %cst_22 = arith.constant dense<0.000000e+00> : vector<8x32xf32>
    %36 = tpu.matmul %24, %35, %cst_22 {dimension_numbers = #tpu.dot_dimension_numbers<[1], [0], [0], [1], [0, 0, 1, 1], [], []>} : vector<8x32xbf16>, vector<32x32xbf16>, vector<8x32xf32> -> vector<8x32xf32>
    %c0_23 = arith.constant 0 : index
    %c0_24 = arith.constant 0 : index
    %37 = vector.load %arg9[%c0_23, %c0_24] : memref<1x32xf32, #tpu.memory_space<vmem>>, vector<1x32xf32>
    %38 = vector.broadcast %37 : vector<1x32xf32> to vector<8x32xf32>
    %39 = arith.addf %36, %38 : vector<8x32xf32>
    %40 = arith.truncf %29 : vector<8x32xf32> to vector<8x32xbf16>
    %41 = vector.shape_cast %40 : vector<8x32xbf16> to vector<8x4x8xbf16>
    %42 = tpu.transpose %41, [1, 0, 2] : vector<8x4x8xbf16> -> vector<4x8x8xbf16>
    %43 = arith.truncf %34 : vector<8x32xf32> to vector<8x32xbf16>
    %44 = vector.shape_cast %43 : vector<8x32xbf16> to vector<8x4x8xbf16>
    %45 = tpu.transpose %44, [1, 0, 2] : vector<8x4x8xbf16> -> vector<4x8x8xbf16>
    %46 = arith.truncf %39 : vector<8x32xf32> to vector<8x32xbf16>
    %47 = vector.shape_cast %46 : vector<8x32xbf16> to vector<8x4x8xbf16>
    %48 = tpu.transpose %47, [1, 0, 2] : vector<8x4x8xbf16> -> vector<4x8x8xbf16>
    "tpu.trace_start"() <{level = 10 : i32, message = "hqd,hkd->hqk"}> : () -> ()
    %cst_25 = arith.constant dense<0.000000e+00> : vector<4x8x8xf32>
    %49 = tpu.matmul %42, %45, %cst_25 {dimension_numbers = #tpu.dot_dimension_numbers<[2], [2], [1], [1], [0, 0, 0, 1, 1, 1], [0], [0]>} : vector<4x8x8xbf16>, vector<4x8x8xbf16>, vector<4x8x8xf32> -> vector<4x8x8xf32>
    "tpu.trace_stop"() : () -> ()
    %cst_26 = arith.constant dense<0xFF800000> : vector<4x8xf32>
    %50 = vector.multi_reduction <maximumf>, %49, %cst_26 [2] : vector<4x8x8xf32> to vector<4x8xf32>
    %51 = vector.shape_cast %50 : vector<4x8xf32> to vector<4x8x1xf32>
    %52 = vector.broadcast %51 : vector<4x8x1xf32> to vector<4x8x8xf32>
    %53 = arith.subf %49, %52 : vector<4x8x8xf32>
    %54 = math.exp %53 : vector<4x8x8xf32>
    %cst_27 = arith.constant dense<0.000000e+00> : vector<4x8xf32>
    %55 = vector.multi_reduction <add>, %54, %cst_27 [2] : vector<4x8x8xf32> to vector<4x8xf32>
    %56 = vector.shape_cast %55 : vector<4x8xf32> to vector<4x8x1xf32>
    %57 = tpu.reciprocal %56 {approx = true} : vector<4x8x1xf32> -> vector<4x8x1xf32>
    %58 = vector.broadcast %57 : vector<4x8x1xf32> to vector<4x8x8xf32>
    %59 = arith.mulf %54, %58 : vector<4x8x8xf32>
    %60 = arith.truncf %59 : vector<4x8x8xf32> to vector<4x8x8xbf16>
    "tpu.trace_start"() <{level = 10 : i32, message = "hqk,hkd->hqd"}> : () -> ()
    %cst_28 = arith.constant dense<0.000000e+00> : vector<4x8x8xf32>
    %61 = tpu.matmul %60, %48, %cst_28 {dimension_numbers = #tpu.dot_dimension_numbers<[2], [1], [1], [2], [0, 0, 0, 1, 1, 2], [0], [0]>} : vector<4x8x8xbf16>, vector<4x8x8xbf16>, vector<4x8x8xf32> -> vector<4x8x8xf32>
    "tpu.trace_stop"() : () -> ()
    %62 = tpu.transpose %61, [1, 0, 2] : vector<4x8x8xf32> -> vector<8x4x8xf32>
    %63 = vector.shape_cast %62 : vector<8x4x8xf32> to vector<8x32xf32>
    %64 = arith.truncf %63 : vector<8x32xf32> to vector<8x32xbf16>
    %c0_29 = arith.constant 0 : index
    %c0_30 = arith.constant 0 : index
    %65 = vector.load %arg10[%c0_29, %c0_30] : memref<32x32xbf16, #tpu.memory_space<vmem>>, vector<32x32xbf16>
    %cst_31 = arith.constant dense<0.000000e+00> : vector<8x32xf32>
    %66 = tpu.matmul %64, %65, %cst_31 {dimension_numbers = #tpu.dot_dimension_numbers<[1], [0], [0], [1], [0, 0, 1, 1], [], []>} : vector<8x32xbf16>, vector<32x32xbf16>, vector<8x32xf32> -> vector<8x32xf32>
    %c0_32 = arith.constant 0 : index
    %c0_33 = arith.constant 0 : index
    %67 = vector.load %arg11[%c0_32, %c0_33] : memref<1x32xf32, #tpu.memory_space<vmem>>, vector<1x32xf32>
    %68 = vector.broadcast %67 : vector<1x32xf32> to vector<8x32xf32>
    %69 = arith.addf %66, %68 : vector<8x32xf32>
    %70 = arith.addf %1, %69 : vector<8x32xf32>
    %c0_34 = arith.constant 0 : index
    %c0_35 = arith.constant 0 : index
    %71 = vector.load %arg12[%c0_34, %c0_35] : memref<1x32xf32, #tpu.memory_space<vmem>>, vector<1x32xf32>
    %c0_36 = arith.constant 0 : index
    %c0_37 = arith.constant 0 : index
    %72 = vector.load %arg13[%c0_36, %c0_37] : memref<1x32xf32, #tpu.memory_space<vmem>>, vector<1x32xf32>
    %cst_38 = arith.constant dense<0.000000e+00> : vector<8xf32>
    %73 = vector.multi_reduction <add>, %70, %cst_38 [1] : vector<8x32xf32> to vector<8xf32>
    %74 = vector.shape_cast %73 : vector<8xf32> to vector<8x1xf32>
    %cst_39 = arith.constant 3.200000e+01 : f32
    %75 = vector.broadcast %cst_39 : f32 to vector<8x1xf32>
    %76 = arith.divf %74, %75 : vector<8x1xf32>
    %77 = vector.broadcast %76 : vector<8x1xf32> to vector<8x32xf32>
    %78 = arith.subf %70, %77 : vector<8x32xf32>
    %79 = arith.mulf %78, %78 : vector<8x32xf32>
    %cst_40 = arith.constant dense<0.000000e+00> : vector<8xf32>
    %80 = vector.multi_reduction <add>, %79, %cst_40 [1] : vector<8x32xf32> to vector<8xf32>
    %81 = vector.shape_cast %80 : vector<8xf32> to vector<8x1xf32>
    %cst_41 = arith.constant 3.200000e+01 : f32
    %82 = vector.broadcast %cst_41 : f32 to vector<8x1xf32>
    %83 = arith.divf %81, %82 : vector<8x1xf32>
    %cst_42 = arith.constant 9.99999974E-6 : f32
    %84 = vector.broadcast %cst_42 : f32 to vector<8x1xf32>
    %85 = arith.addf %83, %84 : vector<8x1xf32>
    %86 = math.rsqrt %85 : vector<8x1xf32>
    %87 = vector.broadcast %86 : vector<8x1xf32> to vector<8x32xf32>
    %88 = arith.mulf %78, %87 : vector<8x32xf32>
    %89 = vector.broadcast %71 : vector<1x32xf32> to vector<8x32xf32>
    %90 = arith.mulf %88, %89 : vector<8x32xf32>
    %91 = vector.broadcast %72 : vector<1x32xf32> to vector<8x32xf32>
    %92 = arith.addf %90, %91 : vector<8x32xf32>
    %93 = arith.truncf %92 : vector<8x32xf32> to vector<8x32xbf16>
    %c0_43 = arith.constant 0 : index
    %c0_44 = arith.constant 0 : index
    %94 = vector.load %arg14[%c0_43, %c0_44] : memref<32x128xbf16, #tpu.memory_space<vmem>>, vector<32x128xbf16>
    %cst_45 = arith.constant dense<0.000000e+00> : vector<8x128xf32>
    %95 = tpu.matmul %93, %94, %cst_45 {dimension_numbers = #tpu.dot_dimension_numbers<[1], [0], [0], [1], [0, 0, 1, 1], [], []>} : vector<8x32xbf16>, vector<32x128xbf16>, vector<8x128xf32> -> vector<8x128xf32>
    %c0_46 = arith.constant 0 : index
    %c0_47 = arith.constant 0 : index
    %96 = vector.load %arg15[%c0_46, %c0_47] : memref<1x128xf32, #tpu.memory_space<vmem>>, vector<1x128xf32>
    %97 = vector.broadcast %96 : vector<1x128xf32> to vector<8x128xf32>
    %98 = arith.addf %95, %97 : vector<8x128xf32>
    %cst_48 = arith.constant 5.000000e-01 : f32
    %99 = vector.broadcast %cst_48 : f32 to vector<8x128xf32>
    %100 = arith.mulf %99, %98 : vector<8x128xf32>
    %cst_49 = arith.constant 0.707106769 : f32
    %101 = vector.broadcast %cst_49 : f32 to vector<8x128xf32>
    %102 = arith.mulf %98, %101 : vector<8x128xf32>
    %103 = math.absf %102 : vector<8x128xf32>
    %cst_50 = arith.constant 0.327591091 : f32
    %104 = vector.broadcast %cst_50 : f32 to vector<8x128xf32>
    %105 = arith.mulf %104, %103 : vector<8x128xf32>
    %cst_51 = arith.constant 1.000000e+00 : f32
    %106 = vector.broadcast %cst_51 : f32 to vector<8x128xf32>
    %107 = arith.addf %106, %105 : vector<8x128xf32>
    %108 = tpu.reciprocal %107 {approx = true} : vector<8x128xf32> -> vector<8x128xf32>
    %cst_52 = arith.constant 1.06140542 : f32
    %109 = vector.broadcast %cst_52 : f32 to vector<8x128xf32>
    %110 = arith.mulf %109, %108 : vector<8x128xf32>
    %cst_53 = arith.constant -1.45315206 : f32
    %111 = vector.broadcast %cst_53 : f32 to vector<8x128xf32>
    %112 = arith.addf %110, %111 : vector<8x128xf32>
    %113 = arith.mulf %112, %108 : vector<8x128xf32>
    %cst_54 = arith.constant 1.42141378 : f32
    %114 = vector.broadcast %cst_54 : f32 to vector<8x128xf32>
    %115 = arith.addf %113, %114 : vector<8x128xf32>
    %116 = arith.mulf %115, %108 : vector<8x128xf32>
    %cst_55 = arith.constant -0.284496725 : f32
    %117 = vector.broadcast %cst_55 : f32 to vector<8x128xf32>
    %118 = arith.addf %116, %117 : vector<8x128xf32>
    %119 = arith.mulf %118, %108 : vector<8x128xf32>
    %cst_56 = arith.constant 0.254829586 : f32
    %120 = vector.broadcast %cst_56 : f32 to vector<8x128xf32>
    %121 = arith.addf %119, %120 : vector<8x128xf32>
    %122 = arith.mulf %121, %108 : vector<8x128xf32>
    %cst_57 = arith.constant 0.000000e+00 : f32
    %123 = vector.broadcast %cst_57 : f32 to vector<8x128xf32>
    %124 = arith.subf %123, %103 : vector<8x128xf32>
    %125 = arith.mulf %124, %103 : vector<8x128xf32>
    %126 = math.exp %125 : vector<8x128xf32>
    %127 = arith.mulf %122, %126 : vector<8x128xf32>
    %cst_58 = arith.constant 1.000000e+00 : f32
    %128 = vector.broadcast %cst_58 : f32 to vector<8x128xf32>
    %129 = arith.subf %128, %127 : vector<8x128xf32>
    %cst_59 = arith.constant 0.000000e+00 : f32
    %130 = vector.broadcast %cst_59 : f32 to vector<8x128xf32>
    %131 = arith.cmpf oge, %102, %130 : vector<8x128xf32>
    %cst_60 = arith.constant 0.000000e+00 : f32
    %132 = vector.broadcast %cst_60 : f32 to vector<8x128xf32>
    %133 = arith.subf %132, %129 : vector<8x128xf32>
    %134 = arith.select %131, %129, %133 : vector<8x128xi1>, vector<8x128xf32>
    %cst_61 = arith.constant 1.000000e+00 : f32
    %135 = vector.broadcast %cst_61 : f32 to vector<8x128xf32>
    %136 = arith.addf %135, %134 : vector<8x128xf32>
    %137 = arith.mulf %100, %136 : vector<8x128xf32>
    %138 = arith.truncf %137 : vector<8x128xf32> to vector<8x128xbf16>
    %c0_62 = arith.constant 0 : index
    %c0_63 = arith.constant 0 : index
    %139 = vector.load %arg16[%c0_62, %c0_63] : memref<128x32xbf16, #tpu.memory_space<vmem>>, vector<128x32xbf16>
    %cst_64 = arith.constant dense<0.000000e+00> : vector<8x32xf32>
    %140 = tpu.matmul %138, %139, %cst_64 {dimension_numbers = #tpu.dot_dimension_numbers<[1], [0], [0], [1], [0, 0, 1, 1], [], []>} : vector<8x128xbf16>, vector<128x32xbf16>, vector<8x32xf32> -> vector<8x32xf32>
    %c0_65 = arith.constant 0 : index
    %c0_66 = arith.constant 0 : index
    %141 = vector.load %arg17[%c0_65, %c0_66] : memref<1x32xf32, #tpu.memory_space<vmem>>, vector<1x32xf32>
    %142 = vector.broadcast %141 : vector<1x32xf32> to vector<8x32xf32>
    %143 = arith.addf %140, %142 : vector<8x32xf32>
    %144 = arith.addf %70, %143 : vector<8x32xf32>
    %c0_67 = arith.constant 0 : index
    %c0_68 = arith.constant 0 : index
    %c0_69 = arith.constant 0 : index
    %145 = vector.load %arg18[%c0_67, %c0_68, %c0_69] : memref<1x8x32xf32, #tpu.memory_space<vmem>>, vector<1x8x32xf32>
    %146 = vector.shape_cast %145 : vector<1x8x32xf32> to vector<8x32xf32>
    %147 = vector.shape_cast %144 : vector<8x32xf32> to vector<1x8x32xf32>
    tpu.vector_store %arg18[%c0_67, %c0_68, %c0_69], %147 {strides = array<i32>} : memref<1x8x32xf32, #tpu.memory_space<vmem>>, vector<1x8x32xf32>,
    return
  }
  func.func @transform_0(%arg0: i32) -> (i32, i32, i32) {
    %c0_i32 = arith.constant 0 : i32
    %c0_i32_0 = arith.constant 0 : i32
    %c0_i32_1 = arith.constant 0 : i32
    return %arg0, %c0_i32, %c0_i32_0 : i32, i32, i32
  }
  func.func @transform_1(%arg0: i32) -> (i32, i32) {
    %c0_i32 = arith.constant 0 : i32
    %c0_i32_0 = arith.constant 0 : i32
    %c0_i32_1 = arith.constant 0 : i32
    return %c0_i32, %c0_i32_0 : i32, i32
  }
  func.func @transform_2(%arg0: i32) -> (i32, i32) {
    %c0_i32 = arith.constant 0 : i32
    %c0_i32_0 = arith.constant 0 : i32
    %c0_i32_1 = arith.constant 0 : i32
    return %c0_i32, %c0_i32_0 : i32, i32
  }
  func.func @transform_3(%arg0: i32) -> (i32, i32) {
    %c0_i32 = arith.constant 0 : i32
    %c0_i32_0 = arith.constant 0 : i32
    %c0_i32_1 = arith.constant 0 : i32
    return %c0_i32, %c0_i32_0 : i32, i32
  }
  func.func @transform_4(%arg0: i32) -> (i32, i32) {
    %c0_i32 = arith.constant 0 : i32
    %c0_i32_0 = arith.constant 0 : i32
    %c0_i32_1 = arith.constant 0 : i32
    return %c0_i32, %c0_i32_0 : i32, i32
  }
  func.func @transform_5(%arg0: i32) -> (i32, i32) {
    %c0_i32 = arith.constant 0 : i32
    %c0_i32_0 = arith.constant 0 : i32
    %c0_i32_1 = arith.constant 0 : i32
    return %c0_i32, %c0_i32_0 : i32, i32
  }
  func.func @transform_6(%arg0: i32) -> (i32, i32) {
    %c0_i32 = arith.constant 0 : i32
    %c0_i32_0 = arith.constant 0 : i32
    %c0_i32_1 = arith.constant 0 : i32
    return %c0_i32, %c0_i32_0 : i32, i32
  }
  func.func @transform_7(%arg0: i32) -> (i32, i32) {
    %c0_i32 = arith.constant 0 : i32
    %c0_i32_0 = arith.constant 0 : i32
    %c0_i32_1 = arith.constant 0 : i32
    return %c0_i32, %c0_i32_0 : i32, i32
  }
  func.func @transform_8(%arg0: i32) -> (i32, i32) {
    %c0_i32 = arith.constant 0 : i32
    %c0_i32_0 = arith.constant 0 : i32
    %c0_i32_1 = arith.constant 0 : i32
    return %c0_i32, %c0_i32_0 : i32, i32
  }
  func.func @transform_9(%arg0: i32) -> (i32, i32) {
    %c0_i32 = arith.constant 0 : i32
    %c0_i32_0 = arith.constant 0 : i32
    %c0_i32_1 = arith.constant 0 : i32
    return %c0_i32, %c0_i32_0 : i32, i32
  }
  func.func @transform_10(%arg0: i32) -> (i32, i32) {
    %c0_i32 = arith.constant 0 : i32
    %c0_i32_0 = arith.constant 0 : i32
    %c0_i32_1 = arith.constant 0 : i32
    return %c0_i32, %c0_i32_0 : i32, i32
  }
  func.func @transform_11(%arg0: i32) -> (i32, i32) {
    %c0_i32 = arith.constant 0 : i32
    %c0_i32_0 = arith.constant 0 : i32
    %c0_i32_1 = arith.constant 0 : i32
    return %c0_i32, %c0_i32_0 : i32, i32
  }
  func.func @transform_12(%arg0: i32) -> (i32, i32) {
    %c0_i32 = arith.constant 0 : i32
    %c0_i32_0 = arith.constant 0 : i32
    %c0_i32_1 = arith.constant 0 : i32
    return %c0_i32, %c0_i32_0 : i32, i32
  }
  func.func @transform_13(%arg0: i32) -> (i32, i32) {
    %c0_i32 = arith.constant 0 : i32
    %c0_i32_0 = arith.constant 0 : i32
    %c0_i32_1 = arith.constant 0 : i32
    return %c0_i32, %c0_i32_0 : i32, i32
  }
  func.func @transform_14(%arg0: i32) -> (i32, i32) {
    %c0_i32 = arith.constant 0 : i32
    %c0_i32_0 = arith.constant 0 : i32
    %c0_i32_1 = arith.constant 0 : i32
    return %c0_i32, %c0_i32_0 : i32, i32
  }
  func.func @transform_15(%arg0: i32) -> (i32, i32) {
    %c0_i32 = arith.constant 0 : i32
    %c0_i32_0 = arith.constant 0 : i32
    %c0_i32_1 = arith.constant 0 : i32
    return %c0_i32, %c0_i32_0 : i32, i32
  }
  func.func @transform_16(%arg0: i32) -> (i32, i32) {
    %c0_i32 = arith.constant 0 : i32
    %c0_i32_0 = arith.constant 0 : i32
    %c0_i32_1 = arith.constant 0 : i32
    return %c0_i32, %c0_i32_0 : i32, i32
  }
  func.func @transform_17(%arg0: i32) -> (i32, i32, i32) {
    %c0_i32 = arith.constant 0 : i32
    %c0_i32_0 = arith.constant 0 : i32
    %c0_i32_1 = arith.constant 0 : i32
    return %arg0, %c0_i32, %c0_i32_0 : i32, i32, i32
  }
}

</mosaic_0001>

<bundles_post_ra>
// kernel: tpu_custom_call.1
= control target key start
LH: loop header
LB: loop body
LE: loop exit
PB: predicated region body
PF: predicated region fallthrough
CT: control target
= control target key end

     0   :  { %s3159_s0 = inlined_call_operand.vmem [shape: f32[2,8,32], index: 0, kind: input, shape index: {}]   ;;  %s3160_s1 = inlined_call_operand.vmem [shape: f32[1,32], index: 1, kind: input, shape index: {}]   ;;  %s3161_s2 = inlined_call_operand.vmem [shape: f32[1,32], index: 2, kind: input, shape index: {}]   ;;  %s3162_s3 = inlined_call_operand.vmem [shape: bf16[32,32], index: 3, kind: input, shape index: {}]   ;;  %s3163_s4 = inlined_call_operand.vmem [shape: f32[1,32], index: 4, kind: input, shape index: {}]   ;;  %s3164_s5 = inlined_call_operand.vmem [shape: bf16[32,32], index: 5, kind: input, shape index: {}]   ;;  %s3165_s6 = inlined_call_operand.vmem [shape: f32[1,32], index: 6, kind: input, shape index: {}]   ;;  %s3166_s7 = inlined_call_operand.vmem [shape: bf16[32,32], index: 7, kind: input, shape index: {}]   ;;  %s3167_s8 = inlined_call_operand.vmem [shape: f32[1,32], index: 8, kind: input, shape index: {}]   ;;  %s3168_s9 = inlined_call_operand.vmem [shape: bf16[32,32], index: 9, kind: input, shape index: {}]   ;;  %s3169_s10 = inlined_call_operand.vmem [shape: f32[1,32], index: 10, kind: input, shape index: {}]   ;;  %s3170_s11 = inlined_call_operand.vmem [shape: f32[1,32], index: 11, kind: input, shape index: {}]   ;;  %s3171_s12 = inlined_call_operand.vmem [shape: f32[1,32], index: 12, kind: input, shape index: {}]   ;;  %s3172_s13 = inlined_call_operand.hbm [shape: bf16[32,128], index: 13, kind: input, shape index: {}]   ;;  %s3173_s14 = inlined_call_operand.vmem [shape: f32[1,128], index: 14, kind: input, shape index: {}]   ;;  %s3174_s15 = inlined_call_operand.vmem [shape: bf16[128,32], index: 15, kind: input, shape index: {}]   ;;  %s3175_s16 = inlined_call_operand.vmem [shape: f32[1,32], index: 16, kind: input, shape index: {}]   ;;  %s3176_s17 = inlined_call_operand.hbm [shape: f32[2,8,32], index: 17, kind: output, shape index: {}]  }
   0x1   :  { %3183 = sst [smem:[#allocation14_spill]] %s3159_s0 }
   0x2   :  { %3184 = sst [smem:[#allocation15_spill]] %s3160_s1 }
   0x3   :  { %22 = vsyncpa [#allocation3], 0 }
   0x4   :  { %23 = vsyncpa [#allocation4], 0 }
   0x5   :  { %25 = vsyncpa [#allocation4 + $0x1], 0  ;;  %s2757_s24 = smov 0   ;;  %s2759_s25 = smov 0  }
   0x6   :  { %s2761_s26 = smov 0   ;;  %s2763_s27 = smov 0  }
   0x7 LB: > { %3185 = sst [smem:[#allocation8_spill]] %s2638_s24  ;;  %s2778_s28 = sadd.s32 4294967295, %s2650_s27   ;;  %s2650_s27 = sphi %s2763_s27, %s3200_s27   ;;  %s2646_s26 = sphi %s2761_s26, %s3205_s26   ;;  %s2642_s25 = sphi %s2759_s25, %s3204_s25   ;;  %s2638_s24 = sphi %s2757_s24, %s3203_s24  }
   0x8   : > { %3186 = sst [smem:[#allocation9_spill]] %s2646_s26  ;;  %s2252_s29 = sadd.s32 4294967294, %s2650_s27  }
   0x9   : > { %3187 = sst [smem:[#allocation10_spill]] %s2650_s27  ;;  %s2782_s0 = sadd.s32 1, %s2650_s27  }
   0xa   : > { %3188 = sst [smem:[#allocation11_spill]] %s2782_s0  ;;  %s400_s30 = sadd.s32 1, %s2646_s26 }
   0xb   : > { %s397_s18 = ssub.s32 %s2650_s27, %s2782_s0  ;;  %p410_p0 = scmp.ne.s32.totalorder %s2646_s26, %s2642_s25 }
   0xc   : > { %p398_p1 = scmp.eq.s32.totalorder %s397_s18, 0  ;;  %p411_p2 = scmp.eq.s32.totalorder %s2778_s28, 1 }
   0xd   : > { %p416_p3 = scmp.ne.s32.totalorder %s2642_s25, %s2638_s24  ;;  %p417_p4 = scmp.eq.s32.totalorder %s2252_s29, 1 }
   0xe   : > { %s2793_s19 = scalar_select %p398_p1, %s2646_s26, %s400_s30  }
   0xf   : > { %p2795_p5 = por %p411_p2, %p410_p0  ;;  %p2799_p6 = por %p417_p4, %p416_p3 }
  0x10   : > { %3189 = sst [smem:[#allocation12_spill]] %s2793_s19  ;;  %p2253_p7 = scmp.ge.s32.totalorder %s2650_s27, 1 }
  0x11   : > { %s3191_s20 = scalar_select %p2799_p6, 1, 0 }
  0x12   : > { %p424_p8 = scmp.lt.s32.totalorder %s2650_s27, 3  ;;  %p2469_p9 = scmp.eq.s32.totalorder %s2778_s28, 0 }
  0x13   : > { %3192 = sst [smem:[#allocation13_spill]] %s3191_s20  ;;  %s2652_s22 = smov [#allocation2]  }
  0x14   : > { %p2806_p10 = pnand %p2253_p7, %p424_p8  ;;  %s472_s23 = sshll.u32 %s2652_s22, 4  ;;  %s473_s23 = int_to_ptr.vmem [resolvable:$true] %s472_s23 }
  0x15   : > { %s2571_s29 = scalar_lea.vmem %s473_s23, 256  ;;  %p2579_p3 = scmp.lt.s32.totalorder %s473_s23, %s473_s23 }
  0x16   : > { %p2461_p11 = pneg %p2806_p10  ;;  %p2572_p0 = scmp.ne.s32.totalorder %s473_s23, %s2571_s29 }
  0x17   : > { %p2580_p4 = scmp.lt.s32.totalorder %s2571_s29, %s2571_s29 }
  0x18   : > { %p2462_p12 = pnand %p2469_p9, %p2461_p11 }
  0x19   : > { %p2581_p6 = por %p2580_p4, %p2579_p3 }
  0x1a   : > { %p2562_p13 = pneg %p2462_p12 }
  0x1c   : > { %p2574_p1 = pnand %p2572_p0, %p2562_p13 }
  0x1e   : > { %p2575_p2 = pneg %p2574_p1 }
  0x20   : > { %p2582_p7 = pnand %p2581_p6, %p2575_p2 }
  0x22   : > { %2585 = shalt.err (!%p2582_p7)
}
  0x23   : > { %s2653_s30 = smov 64   ;;  %s2654_s18 = smov 4  }
  0x24   : > { %2464 = dma.hbm_to_vmem [thread:$0]  (!%p2462_p12), %s3172_s13, 256, %s473_s23, [#allocation3], %s2653_s30, %s2653_s30, %s2654_s18  }
  0x25   : > { %504 = sbr.rel (%p2806_p10) target bundleno = 2581 (0xa15), region = 88 }
  0x2a   : > { %2629 = dma.done.wait (%p2469_p9), [#allocation3], 256  }
  0x2b   : > { %2631 = vsyncadd (%p2469_p9), [#allocation3], 4294967040  ;;  %p555_p8 = scmp.lt.s32.totalorder %s2778_s28, 1  ;;  %s3194_s24 = sld [smem:[#allocation14_spill]]  ;;  %vm563_vm0 = vcmask 261120   ;;  %v2518_v7 = vld [vmem:[%s3162_s3 + $0x8] sm:$0xff]   ;;  %v796_v44 = vlaneseq }
  0x2c   : > { %v2655_v8 = vmov 0.0   ;;  %vm2656_vm1 = vmmov 0   ;;  %v2519_v9 = vld [vmem:[%s3162_s3] sm:$0xff]   ;;  %s3195_s21 = sld [smem:[#allocation15_spill]]  ;;  %v2520_v19 = vld [vmem:[%s3164_s5 + $0x8] sm:$0xff]   ;;  %s2657_s18 = smov 104  }
  0x2d   : > { %s556_s22 = scalar_select %p555_p8, %s2778_s28, 1  ;;  %2347 = vmatprep.subr.bf16.mxu0 %v2655_v8  ;;  %2351 = vmatprep.mubr.msk.bf16.mxu0 %vm2656_vm1, %v2655_v8  ;;  %v2261_v16 = vld [vmem:[%s3161_s2] ss:$0 sm:$0xff]  ;;  %v2522_v22 = vld [vmem:[%s3166_s7 + $0x8] sm:$0xff]   ;;  %v2660_v42 = vmov 1983009808  }
  0x2e   : > { %2348 = vmatpush3.bf16.msra.mxu0 %v2518_v7  ;;  %2371 = vmatprep.subr.bf16.mxu1 %v2655_v8  ;;  %v2521_v21 = vld [vmem:[%s3164_s5] sm:$0xff]   ;;  %v794_v43 = vunpack.c.l.s4 %v2660_v42  ;;  %v2661_v45 = vmov 1934713408   ;;  %v797_v48 = vshrl.u32 %v796_v44, 7  ;;  %v2662_v63 = vmov 0   ;;  %s2664_s23 = smov 8  }
  0x2f   : > { %s2259_s29 = sshll.u32 %s556_s22, 3  ;;  %2349 = vmatprep.subr.bf16.mxu0 %v2655_v8  ;;  %2373 = vmatprep.mubr.msk.bf16.mxu1 %vm2656_vm1, %v2655_v8  ;;  %v2523_v23 = vld [vmem:[%s3166_s7] sm:$0xff]   ;;  %s2658_s22 = smov 120   ;;  %v811_v46 = vunpack.c.l.s4 %v2661_v45  ;;  %vm1292_vm2 = vcmask 64512   ;;  %vm1528_vm3 = vcmask 1043456   ;;  %vm1859_vm4 = vcmask 130048  }
  0x30   : > { %v2266_v28 = vld [vmem:[%s3165_s6] ss:$0 sm:$0xff]  ;;  %v795_v47 = vunpack.c.0.s8 %v794_v43  ;;  %s2665_s30 = smov 24   ;;  %vm1861_vm5 = vcmask 195584   ;;  %s2304_s19 = sshll.u32 %s2778_s28, 7 }
  0x31   : > { %s558_s27 = scalar_lea.vmem %s3194_s24, %s2259_s29  ;;  %v2262_v33 = vld [vmem:[%s3163_s4] ss:$0 sm:$0xff]  ;;  %s2659_s29 = smov 112   ;;  %v812_v49 = vunpack.c.0.s8 %v811_v46 }
  0x32   : > { %v2828_v0 = vld [vmem:[%s558_s27] sm:$0xff]  ;;  %2350 = vmatpush3.bf16.msra.mxu0 %v2519_v9  ;;  %v2893_v50 = vsub.s32 %v795_v47, %v797_v48 }
  0x33   : > { %v564_v1 = vsel %vm563_vm0, %v2828_v0, 0.0  ;;  %2355 = vmatprep.subr.bf16.mxu0 %v2655_v8  ;;  %v2260_v14 = vld [vmem:[%s3195_s21] ss:$0 sm:$0xff]  ;;  %v2896_v54 = vsub.s32 %v812_v49, %v797_v48  ;;  %s2663_s21 = smov 16  }
  0x34   : > { %565 = vadd.xlane.f32.xlu0 %v564_v1 }
  0xbd   : > { %v566_v2 = vpop.xlane.xlu0 %565 }
  0xbe   : > { %v568_v3 = vmul.f32 0.03125, %v566_v2 }
  0xc0   : > { %v569_v4 = vsub.f32 %v2828_v0, %v568_v3 }
  0xc2   : > { %v570_v5 = vmul.f32 %v569_v4, %v569_v4 }
  0xc4   : > { %v571_v6 = vsel %vm563_vm0, %v570_v5, 0.0 }
  0xc5   : > { %572 = vadd.xlane.f32.xlu0 %v571_v6 }
 0x14e   : > { %v573_v10 = vpop.xlane.xlu0 %572 }
 0x14f   : > { %v574_v11 = vmul.f32 0.03125, %v573_v10 }
 0x151   : > { %v575_v12 = vadd.f32 1e-05, %v574_v11 }
 0x153   : > { %2536 = vrsqrt.f32 %v575_v12 }
 0x160   : > { %v2537_v13 = vpop.eup %2536 }
 0x161   : > { %v577_v15 = vmul.f32 %v2537_v13, %v569_v4 }
 0x163   : > { %v584_v17 = vmul.f32 %v2260_v14, %v577_v15 }
 0x165   : > { %v591_v18 = vadd.f32 %v2261_v16, %v584_v17 }
 0x167   : > { %v592_v20 = vpack.c.bf16 %v591_v18, %v591_v18 }
 0x169   : > { %2352 = vmatmul.mubr.msk.bf16.vlgmr.msra.gmra.mxu0 %vm563_vm0, %v592_v20 }
 0x16a   : > { %2356 = vmatpush3.bf16.msra.mxu0 %v2520_v19  ;;  %2359 = vmatprep.mubr.msk.bf16.mxu0 %vm2656_vm1, %v2655_v8 }
 0x16b   : > { %2357 = vmatprep.subr.bf16.mxu0 %v2655_v8 }
 0x16e   : > { %2358 = vmatpush3.bf16.msra.mxu0 %v2521_v21 }
 0x16f   : > { %2363 = vmatprep.subr.bf16.mxu0 %v2655_v8 }
 0x171   : > { %2360 = vmatmul.mubr.msk.bf16.vlgmr.msra.gmra.mxu0 %vm563_vm0, %v592_v20 }
 0x172   : > { %2364 = vmatpush3.bf16.msra.mxu0 %v2522_v22  ;;  %2367 = vmatprep.mubr.msk.bf16.mxu0 %vm2656_vm1, %v2655_v8 }
 0x173   : > { %2365 = vmatprep.subr.bf16.mxu0 %v2655_v8 }
 0x176   : > { %2366 = vmatpush3.bf16.msra.mxu0 %v2523_v23 }
 0x177   : > { %2377 = vmatprep.subr.bf16.mxu0 %v2655_v8 }
 0x179   : > { %2368 = vmatmul.mubr.msk.bf16.vlgmr.msra.gmra.mxu0 %vm563_vm0, %v592_v20 }
 0x17a   : > { %2379 = vmatprep.mubr.msk.bf16.mxu0 %vm2656_vm1, %v2655_v8 }
 0x229   : > { %v653_v24 = vpop.f32.mrf.mxu0 }
 0x22a   : > { %v654_v36 = vadd.f32 %v2262_v33, %v653_v24 }
 0x22b   : > { %v2353_v25 = vpop.f32.mrf.mxu0 }
 0x22c   : > { %v785_v39 = vpack.c.bf16 %v654_v36, %v654_v36 }
 0x22d   : > { %v656_v26 = vpop.f32.mrf.mxu0 }
 0x22e   : > { %v799_v12 = vrot.slane %v785_v39, %v2893_v50 }
 0x22f   : > { %v2354_v27 = vpop.f32.mrf.mxu0 }
 0x231   : > { %v716_v29 = vpop.f32.mrf.mxu0 }
 0x232   : > { %v717_v30 = vadd.f32 %v2266_v28, %v716_v29 }
 0x233   : > { %v2361_v31 = vpop.f32.mrf.mxu0 }
 0x234   : > { %v954_v32 = vpack.c.bf16 %v717_v30, %v717_v30 }
 0x235   : > { %v719_v34 = vpop.f32.mrf.mxu0 }
 0x236   : > { %960 = vrot.lane.b32.xlu0 %v954_v32, %s2657_s18  ;;  %956 = vrot.lane.b32.xlu1 %v954_v32, %s2658_s22  ;;  %v968_v62 = vrot.slane %v954_v32, %v2893_v50 }
 0x237   : > { %v2362_v35 = vpop.f32.mrf.mxu0 }
 0x239   : > { %v2887_v37 = vpop.f32.mrf.mxu0 }
 0x23a   : > { %958 = vrot.lane.b32.xlu1 %v954_v32, %s2659_s29 }
 0x23b   : > { %v2369_v38 = vpop.f32.mrf.mxu0 }
 0x23d   : > { %v782_v40 = vpop.f32.mrf.mxu0 }
 0x23e   : > { %787 = vrot.lane.b32.xlu1 %v785_v39, %s2658_s22 }
 0x23f   : > { %v2370_v41 = vpop.f32.mrf.mxu0 }
 0x242   : > { %789 = vrot.lane.b32.xlu1 %v785_v39, %s2659_s29 }
 0x246   : > { %791 = vrot.lane.b32.xlu1 %v785_v39, %s2657_s18 }
 0x2a8   : > { %v961_v51 = vpop.permute.xlu0 %960  ;;  %v957_v52 = vpop.permute.xlu1 %956 }
 0x2a9   : > { %v1010_v53 = vrot.slane %v961_v51, %v2893_v50  ;;  %v1002_v55 = vrot.slane %v957_v52, %v2893_v50 }
 0x2ab   : > { %v1011_v56 = vcombine.low %v1002_v55, %v1010_v53  ;;  %v1012_v57 = vcombine.high %v1002_v55, %v1010_v53 }
 0x2ac   : > { %v959_v58 = vpop.permute.xlu1 %958 }
 0x2ad   : > { %v1019_v59 = vrot.slane %v1011_v56, %v2896_v54  ;;  %v1026_v60 = vrot.slane %v1012_v57, %v2896_v54  ;;  %v976_v61 = vrot.slane %v959_v58, %v2893_v50 }
 0x2af   : > { %v1027_v1 = vcombine.high %v1019_v59, %v2662_v63  ;;  %v977_v2 = vcombine.low %v968_v62, %v976_v61  ;;  %v978_v3 = vcombine.high %v968_v62, %v976_v61  ;;  %v1028_v5 = vcombine.high %v1026_v60, %v2662_v63 }
 0x2b0   : > { %v788_v4 = vpop.permute.xlu1 %787  ;;  %v1034_v9 = vshrl.u32 %v1019_v59, 16  ;;  %v1050_v11 = vshrl.u32 %v1026_v60, 16 }
 0x2b1   : > { %v985_v6 = vrot.slane %v977_v2, %v2896_v54  ;;  %v992_v7 = vrot.slane %v978_v3, %v2896_v54  ;;  %v1042_v10 = vshrl.u32 %v1027_v1, 16  ;;  %v1058_v18 = vshrl.u32 %v1028_v5, 16 }
 0x2b2   : > { %v833_v30 = vrot.slane %v788_v4, %v2893_v50 }
 0x2b3   : > { %v993_v13 = vcombine.high %v985_v6, %v2662_v63  ;;  %v994_v14 = vcombine.high %v992_v7, %v2662_v63  ;;  %v1031_v15 = vpack.i.b16 %v1019_v59, %v985_v6  ;;  %v1033_v16 = vshrl.u32 %v985_v6, 16 }
 0x2b4   : > { %v790_v17 = vpop.permute.xlu1 %789  ;;  %v1047_v19 = vpack.i.b16 %v1026_v60, %v992_v7  ;;  %v1049_v20 = vshrl.u32 %v992_v7, 16 }
 0x2b5   : > { %v807_v21 = vrot.slane %v790_v17, %v2893_v50  ;;  %v1035_v22 = vpack.i.b16 %v1034_v9, %v1033_v16  ;;  %v1039_v23 = vpack.i.b16 %v1027_v1, %v993_v13  ;;  %v1041_v24 = vshrl.u32 %v993_v13, 16 }
 0x2b6   : > { %v1055_v25 = vpack.i.b16 %v1028_v5, %v994_v14  ;;  %v1051_v26 = vpack.i.b16 %v1050_v11, %v1049_v20  ;;  %v1057_v27 = vshrl.u32 %v994_v14, 16  ;;  %v1061_v28 = vcombine.low %v1031_v15, %v1047_v19 }
 0x2b7   : > { %v808_v29 = vcombine.low %v799_v12, %v807_v21  ;;  %v809_v31 = vcombine.high %v799_v12, %v807_v21  ;;  %v1043_v34 = vpack.i.b16 %v1042_v10, %v1041_v24 }
 0x2b8   : > { %v792_v32 = vpop.permute.xlu1 %791  ;;  %v1069_v33 = vcombine.low %v1039_v23, %v1055_v25  ;;  %v1059_v35 = vpack.i.b16 %v1058_v18, %v1057_v27  ;;  %v1068_v40 = vrot.slane %v1061_v28, %v2893_v50  ;;  %v1086_v42 = vcombine.low %v1035_v22, %v1051_v26 }
 0x2b9   : > { %v816_v36 = vrot.slane %v808_v29, %v2896_v54  ;;  %v841_v38 = vrot.slane %v792_v32, %v2893_v50  ;;  %v823_v39 = vrot.slane %v809_v31, %v2896_v54 }
 0x2ba   : > { %v1076_v41 = vrot.slane %v1069_v33, %v2893_v50  ;;  %v1094_v52 = vcombine.low %v1043_v34, %v1059_v35  ;;  %v1093_v57 = vrot.slane %v1086_v42, %v2893_v50 }
 0x2bb   : > { %v824_v43 = vcombine.high %v816_v36, %v2662_v63  ;;  %v842_v44 = vcombine.low %v833_v30, %v841_v38  ;;  %v843_v45 = vcombine.high %v833_v30, %v841_v38  ;;  %v825_v46 = vcombine.high %v823_v39, %v2662_v63 }
 0x2bc   : > { %v1077_v47 = vcombine.low %v1068_v40, %v1076_v41  ;;  %v864_v48 = vshrl.u32 %v816_v36, 16  ;;  %v880_v55 = vshrl.u32 %v823_v39, 16  ;;  %v1101_v3 = vrot.slane %v1094_v52, %v2893_v50 }
 0x2bd   : > { %v850_v49 = vrot.slane %v842_v44, %v2896_v54  ;;  %v857_v51 = vrot.slane %v843_v45, %v2896_v54  ;;  %v872_v53 = vshrl.u32 %v824_v43, 16  ;;  %v888_v56 = vshrl.u32 %v825_v46, 16 }
 0x2be   : > { %v1084_v2 = vrot.slane %v1077_v47, %v2896_v54  ;;  %v1102_v12 = vcombine.low %v1093_v57, %v1101_v3 }
 0x2bf   : > { %v858_v58 = vcombine.high %v850_v49, %v2662_v63  ;;  %v859_v59 = vcombine.high %v857_v51, %v2662_v63  ;;  %v862_v60 = vpack.i.b16 %v850_v49, %v816_v36  ;;  %v865_v61 = vshrl.u32 %v850_v49, 16 }
 0x2c0   : > { %v878_v62 = vpack.i.b16 %v857_v51, %v823_v39  ;;  %v881_v1 = vshrl.u32 %v857_v51, 16  ;;  %v1109_v17 = vrot.slane %v1102_v12, %v2896_v54  ;;  %v1114_v22 = vshrl.u32 %v1084_v2, 16 }
 0x2c1   : > { %v866_v4 = vpack.i.b16 %v865_v61, %v864_v48  ;;  %v870_v5 = vpack.i.b16 %v858_v58, %v824_v43  ;;  %v873_v6 = vshrl.u32 %v858_v58, 16  ;;  %v886_v7 = vpack.i.b16 %v859_v59, %v825_v46 }
 0x2c2   : > { %v882_v9 = vpack.i.b16 %v881_v1, %v880_v55  ;;  %v889_v10 = vshrl.u32 %v859_v59, 16  ;;  %v892_v11 = vcombine.low %v862_v60, %v878_v62  ;;  %v1113_v21 = vpack.i.b16 %v1109_v17, %v1084_v2 }
 0x2c3   : > { %v874_v13 = vpack.i.b16 %v873_v6, %v872_v53  ;;  %v900_v14 = vcombine.low %v870_v5, %v886_v7  ;;  %v1115_v23 = vshrl.u32 %v1109_v17, 16  ;;  %v1085_v25 = vcombine.high %v1084_v2, %v2662_v63 }
 0x2c4   : > { %v890_v15 = vpack.i.b16 %v889_v10, %v888_v56  ;;  %v917_v16 = vcombine.low %v866_v4, %v882_v9  ;;  %v899_v18 = vrot.slane %v892_v11, %v2893_v50  ;;  %v1110_v26 = vcombine.high %v1109_v17, %v2662_v63 }
 0x2c5   : > { %v907_v19 = vrot.slane %v900_v14, %v2893_v50  ;;  %v1297_v28 = vsel %vm1292_vm2, %v1113_v21, 0  ;;  %v1116_v29 = vpack.i.b16 %v1115_v23, %v1114_v22  ;;  %v1120_v38 = vshrl.u32 %v1085_v25, 16 }
 0x2c6   : > { %v925_v20 = vcombine.low %v874_v13, %v890_v15  ;;  %v924_v27 = vrot.slane %v917_v16, %v2893_v50  ;;  %2372 = vmatpush3.bf16.xpose.msra.mxu1 %v1297_v28  ;;  %v1121_v34 = vshrl.u32 %v1110_v26, 16  ;;  %v1119_v36 = vpack.i.b16 %v1110_v26, %v1085_v25  ;;  %v2270_v13 = vld [vmem:[%s3167_s8] ss:$0 sm:$0xff] }
 0x2c7   : > { %v908_v24 = vcombine.low %v899_v18, %v907_v19  ;;  %v1343_v31 = vsel %vm1292_vm2, %v1116_v29, 0  ;;  %2383 = vmatprep.subr.bf16.mxu1 %v2655_v8  ;;  %v780_v14 = vadd.f32 %v2270_v13, %v2887_v37 }
 0x2c8   : > { %v932_v30 = vrot.slane %v925_v20, %v2893_v50  ;;  %2378 = vmatpush3.bf16.xpose.msra.mxu0 %v1343_v31  ;;  %v1122_v42 = vpack.i.b16 %v1121_v34, %v1120_v38  ;;  %v1389_v43 = vsel %vm1292_vm2, %v1119_v36, 0 }
 0x2c9   : > { %v915_v32 = vrot.slane %v908_v24, %v2896_v54  ;;  %2389 = vmatprep.subr.bf16.mxu0 %v2655_v8  ;;  %v1123_v15 = vpack.c.bf16 %v780_v14, %v780_v14 }
 0x2ca   : > { %v933_v33 = vcombine.low %v924_v27, %v932_v30  ;;  %v1435_v46 = vsel %vm1292_vm2, %v1122_v42, 0 }
 0x2cb   : > { %v945_v40 = vshrl.u32 %v915_v32, 16  ;;  %v916_v47 = vcombine.high %v915_v32, %v2662_v63  ;;  %v1137_v38 = vrot.slane %v1123_v15, %v2893_v50 }
 0x2cc   : > { %v940_v35 = vrot.slane %v933_v33, %v2896_v54 }
 0x2cd   : > { %v951_v51 = vshrl.u32 %v916_v47, 16 }
 0x2ce   : > { %v944_v39 = vpack.i.b16 %v940_v35, %v915_v32  ;;  %v946_v41 = vshrl.u32 %v940_v35, 16  ;;  %v941_v45 = vcombine.high %v940_v35, %v2662_v63 }
 0x2d0   : > { %2374 = vmatmul.mubr.msk.bf16.vlgmr.msra.gmra.mxu1 %vm1292_vm2, %v944_v39  ;;  %v947_v44 = vpack.i.b16 %v946_v41, %v945_v40  ;;  %v952_v48 = vshrl.u32 %v941_v45, 16  ;;  %v950_v49 = vpack.i.b16 %v941_v45, %v916_v47 }
 0x2d1   : > { %2384 = vmatpush3.bf16.xpose.msra.mxu1 %v1389_v43  ;;  %2385 = vmatprep.mubr.msk.bf16.mxu1 %vm2656_vm1, %v2655_v8 }
 0x2d2   : > { %2380 = vmatmul.mubr.msk.bf16.vlgmr.msra.gmra.mxu0 %vm1292_vm2, %v947_v44  ;;  %2395 = vmatprep.subr.bf16.mxu1 %v2655_v8  ;;  %v953_v52 = vpack.i.b16 %v952_v48, %v951_v51 }
 0x2d3   : > { %2390 = vmatpush3.bf16.xpose.msra.mxu0 %v1435_v46  ;;  %2391 = vmatprep.mubr.msk.bf16.mxu0 %vm2656_vm1, %v2655_v8 }
 0x2d4   : > { %2401 = vmatprep.subr.bf16.mxu0 %v2655_v8 }
 0x2d8   : > { %2386 = vmatmul.mubr.msk.bf16.vlgmr.msra.gmra.mxu1 %vm1292_vm2, %v950_v49 }
 0x2d9   : > { %2397 = vmatprep.mubr.msk.bf16.mxu1 %vm2656_vm1, %v2655_v8 }
 0x2da   : > { %2392 = vmatmul.mubr.msk.bf16.vlgmr.msra.gmra.mxu0 %vm1292_vm2, %v953_v52 }
 0x2db   : > { %2403 = vmatprep.mubr.msk.bf16.mxu0 %vm2656_vm1, %v2655_v8 }
 0x390   : > { %v1333_v53 = vpop.f32.mrf.mxu1 }
 0x391   : > { %v1477_v55 = vsel %vm1292_vm2, %v1333_v53, -inf }
 0x392   : > { %1478 = vmax.xlane.f32.xlu1 %v1477_v55  ;;  %v2375_v56 = vpop.f32.mrf.mxu1  ;;  %v1379_v57 = vpop.f32.mrf.mxu0 }
 0x393   : > { %v1480_v58 = vsel %vm1292_vm2, %v1379_v57, -inf }
 0x394   : > { %v1336_v59 = vpop.f32.mrf.mxu1  ;;  %1481 = vmax.xlane.f32.xlu0 %v1480_v58  ;;  %v2381_v60 = vpop.f32.mrf.mxu0 }
 0x396   : > { %v2376_v61 = vpop.f32.mrf.mxu1  ;;  %v1382_v62 = vpop.f32.mrf.mxu0 }
 0x398   : > { %v2382_v1 = vpop.f32.mrf.mxu0  ;;  %v1425_v2 = vpop.f32.mrf.mxu1 }
 0x399   : > { %v1483_v3 = vsel %vm1292_vm2, %v1425_v2, -inf }
 0x39a   : > { %1484 = vmax.xlane.f32.xlu1 %v1483_v3  ;;  %v2387_v4 = vpop.f32.mrf.mxu1  ;;  %v1471_v5 = vpop.f32.mrf.mxu0 }
 0x39b   : > { %v1486_v9 = vsel %vm1292_vm2, %v1471_v5, -inf }
 0x39c   : > { %v1428_v6 = vpop.f32.mrf.mxu1  ;;  %v2393_v7 = vpop.f32.mrf.mxu0 }
 0x39e   : > { %v2388_v10 = vpop.f32.mrf.mxu1  ;;  %1487 = vmax.xlane.f32.xlu1 %v1486_v9  ;;  %v1474_v11 = vpop.f32.mrf.mxu0 }
 0x3a0   : > { %v2394_v12 = vpop.f32.mrf.mxu0 }
 0x3af   : > { %1127 = vrot.lane.b32.xlu1 %v1123_v15, %s2659_s29 }
 0x41b   : > { %v1479_v16 = vpop.xlane.xlu1 %1478 }
 0x41c   : > { %v1489_v17 = vsub.f32 %v1333_v53, %v1479_v16 }
 0x41d   : > { %v1482_v18 = vpop.xlane.xlu0 %1481 }
 0x41e   : > { %v1493_v19 = vmul.f32 1.442695, %v1489_v17  ;;  %v1490_v20 = vsub.f32 %v1379_v57, %v1482_v18 }
 0x420   : > { %2538 = vpow2.f32 %v1493_v19  ;;  %v1495_v21 = vmul.f32 1.442695, %v1490_v20 }
 0x422   : > { %2540 = vpow2.f32 %v1495_v21 }
 0x423   : > { %v1485_v25 = vpop.xlane.xlu1 %1484 }
 0x424   : > { %v1491_v27 = vsub.f32 %v1425_v2, %v1485_v25 }
 0x426   : > { %v1497_v29 = vmul.f32 1.442695, %v1491_v27 }
 0x427   : > { %v1488_v26 = vpop.xlane.xlu1 %1487 }
 0x428   : > { %v1492_v28 = vsub.f32 %v1471_v5, %v1488_v26  ;;  %2542 = vpow2.f32 %v1497_v29 }
 0x42a   : > { %v1499_v30 = vmul.f32 1.442695, %v1492_v28 }
 0x42b   : > { %v1128_v35 = vpop.permute.xlu1 %1127 }
 0x42c   : > { %2544 = vpow2.f32 %v1499_v30  ;;  %v1145_v36 = vrot.slane %v1128_v35, %v2893_v50 }
 0x42d   : > { %v2966_v22 = vpop.eup %2538 }
 0x42e   : > { %v1501_v23 = vsel %vm1292_vm2, %v2966_v22, 0.0  ;;  %v1146_v40 = vcombine.low %v1137_v38, %v1145_v36  ;;  %v1147_v42 = vcombine.high %v1137_v38, %v1145_v36 }
 0x42f   : > { %v2970_v24 = vpop.eup %2540  ;;  %1502 = vadd.xlane.f32.xlu0 %v1501_v23 }
 0x430   : > { %v1504_v37 = vsel %vm1292_vm2, %v2970_v24, 0.0  ;;  %v1154_v44 = vrot.slane %v1146_v40, %v2896_v54  ;;  %v1161_v48 = vrot.slane %v1147_v42, %v2896_v54 }
 0x431   : > { %1505 = vadd.xlane.f32.xlu1 %v1504_v37 }
 0x432   : > { %v1162_v52 = vcombine.high %v1154_v44, %v2662_v63  ;;  %v1163_v56 = vcombine.high %v1161_v48, %v2662_v63  ;;  %v1202_v57 = vshrl.u32 %v1154_v44, 16  ;;  %v1218_v1 = vshrl.u32 %v1161_v48, 16 }
 0x434   : > { %v1210_v62 = vshrl.u32 %v1162_v52, 16  ;;  %v1226_v9 = vshrl.u32 %v1163_v56, 16 }
 0x435   : > { %v2976_v31 = vpop.eup %2542 }
 0x436   : > { %v1507_v33 = vsel %vm1292_vm2, %v2976_v31, 0.0 }
 0x439   : > { %v2978_v32 = vpop.eup %2544 }
 0x43a   : > { %v1510_v34 = vsel %vm1292_vm2, %v2978_v32, 0.0 }
 0x442   : > { %1129 = vrot.lane.b32.xlu1 %v1123_v15, %s2657_s18  ;;  %s552_s18 = sand.u32 1, %s2642_s25  }
 0x443   : > { %s2168_s28 = scalar_lea.sflag [#allocation4], %s552_s18 }
 0x445   : > { %1125 = vrot.lane.b32.xlu0 %v1123_v15, %s2658_s22  ;;  %s2258_s22 = sshll.u32 %s552_s18, 3 }
 0x446   : > { %s554_s24 = scalar_lea.vmem [#allocation5], %s2258_s22 }
 0x447   : > { %s2181_s27 = sshll.u32 %s554_s24, 4  ;;  %s3119_s27 = int_to_ptr.vmem [resolvable:$true] %s2181_s27 }
 0x464   : > { %1508 = vadd.xlane.f32.xlu0 %v1507_v33 }
 0x466   : > { %1511 = vadd.xlane.f32.xlu1 %v1510_v34 }
 0x4b8   : > { %v1503_v39 = vpop.xlane.xlu0 %1502 }
 0x4b9   : > { %2546 = vrcp.f32 %v1503_v39 }
 0x4ba   : > { %v1506_v41 = vpop.xlane.xlu1 %1505 }
 0x4bb   : > { %2548 = vrcp.f32 %v1506_v41 }
 0x4bc   : > { %v1126_v43 = vpop.permute.xlu0 %1125 }
 0x4bd   : > { %v1171_v46 = vrot.slane %v1126_v43, %v2893_v50 }
 0x4be   : > { %v1130_v45 = vpop.permute.xlu1 %1129 }
 0x4bf   : > { %v1179_v47 = vrot.slane %v1130_v45, %v2893_v50 }
 0x4c1   : > { %v1180_v49 = vcombine.low %v1171_v46, %v1179_v47  ;;  %v1181_v51 = vcombine.high %v1171_v46, %v1179_v47 }
 0x4c3   : > { %v1188_v53 = vrot.slane %v1180_v49, %v2896_v54  ;;  %v1195_v55 = vrot.slane %v1181_v51, %v2896_v54 }
 0x4c5   : > { %v1196_v58 = vcombine.high %v1188_v53, %v2662_v63  ;;  %v1197_v59 = vcombine.high %v1195_v55, %v2662_v63  ;;  %v1200_v60 = vpack.i.b16 %v1188_v53, %v1154_v44  ;;  %v1203_v61 = vshrl.u32 %v1188_v53, 16 }
 0x4c6   : > { %v1216_v2 = vpack.i.b16 %v1195_v55, %v1161_v48  ;;  %v1219_v3 = vshrl.u32 %v1195_v55, 16  ;;  %v2547_v25 = vpop.eup %2546 }
 0x4c7   : > { %v1204_v4 = vpack.i.b16 %v1203_v61, %v1202_v57  ;;  %v1208_v5 = vpack.i.b16 %v1196_v58, %v1162_v52  ;;  %v1211_v6 = vshrl.u32 %v1196_v58, 16  ;;  %v1224_v7 = vpack.i.b16 %v1197_v59, %v1163_v56  ;;  %v2524_v57 = vld [vmem:[%s3168_s9 + $0x8] sm:$0xff]  }
 0x4c8   : > { %v1220_v10 = vpack.i.b16 %v1219_v3, %v1218_v1  ;;  %v1227_v11 = vshrl.u32 %v1197_v59, 16  ;;  %v1230_v12 = vcombine.low %v1200_v60, %v1216_v2  ;;  %v2549_v27 = vpop.eup %2548  ;;  %v1517_v30 = vmul.f32 %v2547_v25, %v2966_v22 }
 0x4c9   : > { %v1212_v13 = vpack.i.b16 %v1211_v6, %v1210_v62  ;;  %v1238_v14 = vcombine.low %v1208_v5, %v1224_v7  ;;  %v1518_v38 = vmul.f32 %v2549_v27, %v2970_v24 }
 0x4ca   : > { %v1228_v15 = vpack.i.b16 %v1227_v11, %v1226_v9  ;;  %v1255_v16 = vcombine.low %v1204_v4, %v1220_v10  ;;  %v1237_v17 = vrot.slane %v1230_v12, %v2893_v50  ;;  %v1521_v45 = vpack.c.bf16 %v1517_v30, %v1517_v30 }
 0x4cb   : > { %v1245_v18 = vrot.slane %v1238_v14, %v2893_v50  ;;  %v1522_v46 = vpack.c.bf16 %v1518_v38, %v1518_v38 }
 0x4cc   : > { %v1263_v19 = vcombine.low %v1212_v13, %v1228_v15  ;;  %v1262_v21 = vrot.slane %v1255_v16, %v2893_v50 }
 0x4cd   : > { %v1246_v20 = vcombine.low %v1237_v17, %v1245_v18 }
 0x4ce   : > { %v1270_v23 = vrot.slane %v1263_v19, %v2893_v50 }
 0x4cf   : > { %v1253_v37 = vrot.slane %v1246_v20, %v2896_v54 }
 0x4d0   : > { %v1271_v26 = vcombine.low %v1262_v21, %v1270_v23 }
 0x4d1   : > { %v1254_v28 = vcombine.high %v1253_v37, %v2662_v63  ;;  %v1283_v34 = vshrl.u32 %v1253_v37, 16 }
 0x4d2   : > { %v1278_v29 = vrot.slane %v1271_v26, %v2896_v54 }
 0x4d3   : > { %v1289_v39 = vshrl.u32 %v1254_v28, 16 }
 0x4d4   : > { %v1282_v33 = vpack.i.b16 %v1278_v29, %v1253_v37  ;;  %v1284_v35 = vshrl.u32 %v1278_v29, 16  ;;  %v1279_v36 = vcombine.high %v1278_v29, %v2662_v63  ;;  %v2525_v37 = vld [vmem:[%s3168_s9] sm:$0xff]  }
 0x4d6   : > { %v1530_v40 = vsel %vm1528_vm3, %v1282_v33, 0  ;;  %v1285_v41 = vpack.i.b16 %v1284_v35, %v1283_v34  ;;  %v1288_v42 = vpack.i.b16 %v1279_v36, %v1254_v28  ;;  %v1290_v43 = vshrl.u32 %v1279_v36, 16 }
 0x4d7   : > { %2396 = vmatpush3.bf16.msra.mxu1 %v1530_v40 }
 0x4d8   : > { %v1576_v44 = vsel %vm1528_vm3, %v1285_v41, 0  ;;  %2407 = vmatprep.subr.bf16.mxu1 %v2655_v8  ;;  %v1291_v22 = vpack.i.b16 %v1290_v43, %v1289_v39  ;;  %v1622_v63 = vsel %vm1528_vm3, %v1288_v42, 0 }
 0x4d9   : > { %2402 = vmatpush3.bf16.msra.mxu0 %v1576_v44 }
 0x4da   : > { %2398 = vmatmul.mubr.msk.bf16.vlgmr.msra.gmra.mxu1 %vm1292_vm2, %v1521_v45  ;;  %2413 = vmatprep.subr.bf16.mxu0 %v2655_v8  ;;  %v1668_v24 = vsel %vm1528_vm3, %v1291_v22, 0 }
 0x4db   : > { %2408 = vmatpush3.bf16.msra.mxu1 %v1622_v63  ;;  %2409 = vmatprep.mubr.msk.bf16.mxu1 %vm2656_vm1, %v2655_v8 }
 0x4dc   : > { %2404 = vmatmul.mubr.msk.bf16.vlgmr.msra.gmra.mxu0 %vm1292_vm2, %v1522_v46  ;;  %2419 = vmatprep.subr.bf16.mxu1 %v2655_v8 }
 0x4dd   : > { %2414 = vmatpush3.bf16.msra.mxu0 %v1668_v24  ;;  %2415 = vmatprep.mubr.msk.bf16.mxu0 %vm2656_vm1, %v2655_v8 }
 0x4de   : > { %2427 = vmatprep.subr.bf16.mxu0 %v2655_v8 }
 0x4ed   : > { %v1509_v47 = vpop.xlane.xlu0 %1508 }
 0x4ee   : > { %2550 = vrcp.f32 %v1509_v47 }
 0x4ef   : > { %v1512_v48 = vpop.xlane.xlu1 %1511 }
 0x4f0   : > { %2552 = vrcp.f32 %v1512_v48 }
 0x4fb   : > { %v2551_v49 = vpop.eup %2550 }
 0x4fc   : > { %v1519_v51 = vmul.f32 %v2551_v49, %v2976_v31 }
 0x4fd   : > { %v2553_v52 = vpop.eup %2552 }
 0x4fe   : > { %v1523_v53 = vpack.c.bf16 %v1519_v51, %v1519_v51  ;;  %v1520_v55 = vmul.f32 %v2553_v52, %v2978_v32 }
 0x500   : > { %2410 = vmatmul.mubr.msk.bf16.vlgmr.msra.gmra.mxu1 %vm1292_vm2, %v1523_v53  ;;  %v1524_v56 = vpack.c.bf16 %v1520_v55, %v1520_v55 }
 0x501   : > { %2423 = vmatprep.mubr.msk.bf16.mxu1 %vm2656_vm1, %v2655_v8  ;;  %2420 = vmatpush3.bf16.msra.mxu1 %v2524_v57 }
 0x502   : > { %2416 = vmatmul.mubr.msk.bf16.vlgmr.msra.gmra.mxu0 %vm1292_vm2, %v1524_v56  ;;  %2421 = vmatprep.subr.bf16.mxu1 %v2655_v8  ;;  %v2284_v56 = vld [vmem:[%s3169_s10] ss:$0 sm:$0xff] }
 0x503   : > { %2431 = vmatprep.mubr.msk.bf16.mxu0 %vm2656_vm1, %v2655_v8 }
 0x505   : > { %2422 = vmatpush3.bf16.msra.mxu1 %v2525_v37  ;;  %v2534_v37 = vld [vmem:[%s3174_s15 + $0x8] sm:$0xff]  }
 0x506   : > { %2435 = vmatprep.subr.bf16.mxu1 %v2655_v8 }
 0x59a   : > { %v1566_v31 = vpop.f32.mrf.mxu1 }
 0x59c   : > { %v2399_v32 = vpop.f32.mrf.mxu1  ;;  %v1612_v58 = vpop.f32.mrf.mxu0 }
 0x59e   : > { %v1569_v59 = vpop.f32.mrf.mxu1  ;;  %v2405_v60 = vpop.f32.mrf.mxu0 }
 0x5a0   : > { %v2400_v61 = vpop.f32.mrf.mxu1  ;;  %v1615_v62 = vpop.f32.mrf.mxu0 }
 0x5a2   : > { %v2406_v1 = vpop.f32.mrf.mxu0 }
 0x5c0   : > { %v1658_v2 = vpop.f32.mrf.mxu1 }
 0x5c1   : > { %v1710_v3 = vcombine.low %v1566_v31, %v1658_v2  ;;  %v1711_v4 = vcombine.high %v1566_v31, %v1658_v2 }
 0x5c2   : > { %v2411_v5 = vpop.f32.mrf.mxu1  ;;  %v1704_v6 = vpop.f32.mrf.mxu0 }
 0x5c3   : > { %v1726_v7 = vcombine.low %v1612_v58, %v1704_v6  ;;  %v1727_v9 = vcombine.high %v1612_v58, %v1704_v6  ;;  %v1718_v12 = vrot.slane %v1710_v3, %v2893_v50  ;;  %v1725_v13 = vrot.slane %v1711_v4, %v2893_v50  ;;  %v2526_v5 = vld [vmem:[#allocation2 + $0x8] sm:$0xff]   ;;  %v2527_v6 = vld [vmem:[#allocation2] sm:$0xff]  }
 0x5c4   : > { %v1661_v10 = vpop.f32.mrf.mxu1  ;;  %v2417_v11 = vpop.f32.mrf.mxu0  ;;  %2428 = vmatpush3.bf16.msra.mxu0 %v2526_v5 }
 0x5c5   : > { %v1734_v14 = vrot.slane %v1726_v7, %v2893_v50  ;;  %v1741_v15 = vrot.slane %v1727_v9, %v2893_v50  ;;  %2429 = vmatprep.subr.bf16.mxu0 %v2655_v8  ;;  %v2288_v11 = vld [vmem:[%s3170_s11] ss:$0 sm:$0xff] }
 0x5c6   : > { %v2412_v16 = vpop.f32.mrf.mxu1  ;;  %v1707_v17 = vpop.f32.mrf.mxu0 }
 0x5c7   : > { %v1742_v18 = vcombine.low %v1718_v12, %v1734_v14  ;;  %v1743_v19 = vcombine.high %v1718_v12, %v1734_v14  ;;  %v1758_v20 = vcombine.low %v1725_v13, %v1741_v15  ;;  %v1759_v21 = vcombine.high %v1725_v13, %v1741_v15  ;;  %v2289_v13 = vld [vmem:[%s3171_s12] ss:$0 sm:$0xff]  ;;  %v2528_v17 = vld [vmem:[%s3174_s15 + $0x38] sm:$0xff]  }
 0x5c8   : > { %v2418_v23 = vpop.f32.mrf.mxu0  ;;  %2430 = vmatpush3.bf16.msra.mxu0 %v2527_v6 }
 0x5c9   : > { %v1750_v25 = vrot.slane %v1742_v18, %v2896_v54  ;;  %v1757_v26 = vrot.slane %v1743_v19, %v2896_v54  ;;  %v1766_v27 = vrot.slane %v1758_v20, %v2896_v54  ;;  %v1773_v28 = vrot.slane %v1759_v21, %v2896_v54  ;;  %v2529_v18 = vld [vmem:[%s3174_s15 + $0x30] sm:$0xff]   ;;  %v2530_v19 = vld [vmem:[%s3174_s15 + $0x28] sm:$0xff]   ;;  %v2531_v20 = vld [vmem:[%s3174_s15 + $0x20] sm:$0xff]  }
 0x5ca   : > { %v2532_v21 = vld [vmem:[%s3174_s15 + $0x18] sm:$0xff]   ;;  %v2533_v23 = vld [vmem:[%s3174_s15 + $0x10] sm:$0xff]  }
 0x5cb   : > { %v1778_v29 = vcombine.low %v1750_v25, %v1757_v26  ;;  %v2282_v30 = vcombine.high %v1750_v25, %v1757_v26  ;;  %v1794_v33 = vcombine.low %v1766_v27, %v1773_v28  ;;  %v2283_v34 = vcombine.high %v1766_v27, %v1773_v28  ;;  %v2535_v25 = vld [vmem:[%s3174_s15] sm:$0xff]  }
 0x5cc   : > { %v2290_v26 = vld [vmem:[%s3173_s14] ss:$0 sm:$0xff] }
 0x5cd   : > { %v1785_v35 = vrot.slane %v1778_v29, %v2893_v50  ;;  %v1793_v36 = vrot.slane %v2282_v30, %v2893_v50  ;;  %v1801_v38 = vrot.slane %v1794_v33, %v2893_v50  ;;  %v1809_v39 = vrot.slane %v2283_v34, %v2893_v50 }
 0x5cf   : > { %v1811_v40 = vcombine.high %v1785_v35, %v1793_v36  ;;  %v1827_v41 = vcombine.high %v1801_v38, %v1809_v39  ;;  %v1810_v42 = vcombine.low %v1785_v35, %v1793_v36  ;;  %v1826_v43 = vcombine.low %v1801_v38, %v1809_v39 }
 0x5d1   : > { %v1825_v44 = vrot.slane %v1811_v40, %v2896_v54  ;;  %v1841_v45 = vrot.slane %v1827_v41, %v2896_v54  ;;  %v1818_v22 = vrot.slane %v1810_v42, %v2896_v54  ;;  %v1834_v63 = vrot.slane %v1826_v43, %v2896_v54 }
 0x5d3   : > { %v1844_v46 = vcombine.low %v1825_v44, %v1841_v45  ;;  %v1843_v24 = vcombine.high %v1818_v22, %v1834_v63  ;;  %v1842_v47 = vcombine.low %v1818_v22, %v1834_v63  ;;  %v1845_v50 = vcombine.high %v1825_v44, %v1841_v45 }
 0x5d5   : > { %1851 = vrot.lane.b32.xlu1 %v1844_v46, %s2663_s21  ;;  %1847 = vrot.lane.b32.xlu0 %v1843_v24, %s2664_s23  ;;  %s3117_s21 = scalar_lea.hbm %s3176_s17, %s2304_s19  ;;  %s2586_s23 = scalar_lea.vmem %s3119_s27, 128 }
 0x5d6   : > { %p2587_p6 = scmp.ne.s32.totalorder %s3119_s27, %s2586_s23 }
 0x5d8   : > { %p2588_p9 = pnand %p2587_p6, %p2795_p5 }
 0x5d9   : > { %1855 = vrot.lane.b32.xlu0 %v1845_v50, %s2665_s30  ;;  %s2666_s30 = smov [#allocation5]  }
 0x5da   : > { %p2589_p10 = pneg %p2588_p9  ;;  %s2590_s22 = sshll.u32 %s2666_s30, 4  ;;  %s2591_s22 = int_to_ptr.vmem [resolvable:$false] %s2590_s22 }
 0x5db   : > { %s2592_s29 = scalar_lea.vmem %s2591_s22, 256  ;;  %p2593_p11 = scmp.lt.s32.totalorder %s3119_s27, %s2591_s22 }
 0x5dc   : > { %p2594_p12 = scmp.lt.s32.totalorder %s2592_s29, %s2586_s23 }
 0x5de   : > { %p2595_p13 = por %p2594_p12, %p2593_p11 }
 0x5e0   : > { %p2596_p0 = pnand %p2595_p13, %p2589_p10 }
 0x647   : > { %v1848_v48 = vpop.permute.xlu0 %1847  ;;  %v1852_v49 = vpop.permute.xlu1 %1851 }
 0x648   : > { %v1858_v51 = vsel %vm1292_vm2, %v1842_v47, %v1848_v48 }
 0x649   : > { %v1860_v53 = vsel %vm1859_vm4, %v1858_v51, %v1852_v49 }
 0x64b   : > { %v1856_v52 = vpop.permute.xlu0 %1855 }
 0x64c   : > { %v1862_v55 = vsel %vm1861_vm5, %v1860_v53, %v1856_v52 }
 0x64d   : > { %v1863_v54 = vpack.c.bf16 %v1862_v55, %v1862_v55 }
 0x64f   : > { %2424 = vmatmul.mubr.msk.bf16.vlgmr.msra.gmra.mxu1 %vm563_vm0, %v1863_v54 }
 0x650   : > { %2451 = vmatprep.mubr.msk.bf16.mxu1 %vm2656_vm1, %v2655_v8  ;;  %2436 = vmatpush3.bf16.msra.mxu1 %v2528_v17 }
 0x651   : > { %2437 = vmatprep.subr.bf16.mxu1 %v2655_v8 }
 0x654   : > { %2438 = vmatpush3.bf16.msra.mxu1 %v2529_v18 }
 0x655   : > { %2439 = vmatprep.subr.bf16.mxu1 %v2655_v8 }
 0x658   : > { %2440 = vmatpush3.bf16.msra.mxu1 %v2530_v19 }
 0x659   : > { %2441 = vmatprep.subr.bf16.mxu1 %v2655_v8 }
 0x65c   : > { %2442 = vmatpush3.bf16.msra.mxu1 %v2531_v20 }
 0x65d   : > { %2443 = vmatprep.subr.bf16.mxu1 %v2655_v8 }
 0x660   : > { %2444 = vmatpush3.bf16.msra.mxu1 %v2532_v21 }
 0x661   : > { %2445 = vmatprep.subr.bf16.mxu1 %v2655_v8 }
 0x664   : > { %2446 = vmatpush3.bf16.msra.mxu1 %v2533_v23 }
 0x665   : > { %2447 = vmatprep.subr.bf16.mxu1 %v2655_v8 }
 0x668   : > { %2448 = vmatpush3.bf16.msra.mxu1 %v2534_v37 }
 0x669   : > { %2449 = vmatprep.subr.bf16.mxu1 %v2655_v8 }
 0x66c   : > { %2450 = vmatpush3.bf16.msra.mxu1 %v2535_v25 }
 0x70f   : > { %v1924_v57 = vpop.f32.mrf.mxu1 }
 0x710   : > { %v1925_v31 = vadd.f32 %v2284_v56, %v1924_v57  ;;  %v2294_v57 = vld [vmem:[%s3175_s16] ss:$0 sm:$0xff] }
 0x711   : > { %v2425_v32 = vpop.f32.mrf.mxu1 }
 0x712   : > { %v3060_v58 = vadd.f32 %v1925_v31, %v2828_v0 }
 0x713   : > { %v1927_v59 = vpop.f32.mrf.mxu1 }
 0x714   : > { %v1933_v60 = vsel %vm563_vm0, %v3060_v58, 0.0 }
 0x715   : > { %1934 = vadd.xlane.f32.xlu1 %v1933_v60  ;;  %v2426_v61 = vpop.f32.mrf.mxu1 }
 0x79e   : > { %v1935_v62 = vpop.xlane.xlu1 %1934 }
 0x79f   : > { %v1936_v1 = vmul.f32 0.03125, %v1935_v62 }
 0x7a1   : > { %v1937_v2 = vsub.f32 %v3060_v58, %v1936_v1 }
 0x7a3   : > { %v1938_v3 = vmul.f32 %v1937_v2, %v1937_v2 }
 0x7a5   : > { %v1939_v4 = vsel %vm563_vm0, %v1938_v3, 0.0 }
 0x7a6   : > { %1940 = vadd.xlane.f32.xlu0 %v1939_v4 }
 0x82f   : > { %v1941_v0 = vpop.xlane.xlu0 %1940 }
 0x830   : > { %v1942_v7 = vmul.f32 0.03125, %v1941_v0 }
 0x832   : > { %v1943_v9 = vadd.f32 1e-05, %v1942_v7 }
 0x834   : > { %2554 = vrsqrt.f32 %v1943_v9 }
 0x841   : > { %v2555_v10 = vpop.eup %2554 }
 0x842   : > { %v1945_v12 = vmul.f32 %v2555_v10, %v1937_v2 }
 0x844   : > { %v1952_v14 = vmul.f32 %v2288_v11, %v1945_v12 }
 0x846   : > { %v1959_v15 = vadd.f32 %v2289_v13, %v1952_v14 }
 0x848   : > { %v1960_v16 = vpack.c.bf16 %v1959_v15, %v1959_v15 }
 0x84a   : > { %2432 = vmatmul.mubr.msk.bf16.vlgmr.msra.gmra.mxu0 %vm563_vm0, %v1960_v16 }
 0x90a   : > { %v2021_v27 = vpop.f32.mrf.mxu0 }
 0x90b   : > { %v2022_v28 = vadd.f32 %v2290_v26, %v2021_v27 }
 0x90c   : > { %v2433_v29 = vpop.f32.mrf.mxu0 }
 0x90d   : > { %v2028_v30 = vmul.f32 0.70710677, %v2022_v28  ;;  %v2027_v53 = vmul.f32 0.5, %v2022_v28 }
 0x90e   : > { %v2024_v33 = vpop.f32.mrf.mxu0 }
 0x90f   : > { %v2029_v34 = vand.u32 2147483647, %v2028_v30  ;;  %vm2048_vm6 = vcmp.ge.f32.partialorder %v2028_v30, 0.0 }
 0x910   : > { %v2434_v35 = vpop.f32.mrf.mxu0 }
 0x911   : > { %v2030_v36 = vmul.f32 0.3275911, %v2029_v34  ;;  %v2042_v39 = vsub.f32 0.0, %v2029_v34 }
 0x913   : > { %v2031_v38 = vadd.f32 1.0, %v2030_v36  ;;  %v2043_v40 = vmul.f32 %v2042_v39, %v2029_v34 }
 0x915   : > { %2556 = vrcp.f32 %v2031_v38  ;;  %v2044_v8 = vmul.f32 1.442695, %v2043_v40 }
 0x917   : > { %2558 = vpow2.f32 %v2044_v8 }
 0x922   : > { %v2557_v41 = vpop.eup %2556 }
 0x923   : > { %v2033_v42 = vmul.f32 1.0614054, %v2557_v41 }
 0x924   : > { %v2559_v50 = vpop.eup %2558 }
 0x925   : > { %v2034_v43 = vadd.f32 -1.4531521, %v2033_v42 }
 0x927   : > { %v2035_v44 = vmul.f32 %v2557_v41, %v2034_v43 }
 0x929   : > { %v2036_v45 = vadd.f32 1.4214138, %v2035_v44 }
 0x92b   : > { %v2037_v22 = vmul.f32 %v2557_v41, %v2036_v45 }
 0x92d   : > { %v2038_v63 = vadd.f32 -0.28449672, %v2037_v22 }
 0x92f   : > { %v2039_v46 = vmul.f32 %v2557_v41, %v2038_v63 }
 0x931   : > { %v2040_v24 = vadd.f32 0.2548296, %v2039_v46 }
 0x933   : > { %v2041_v47 = vmul.f32 %v2557_v41, %v2040_v24 }
 0x935   : > { %v2046_v48 = vmul.f32 %v2559_v50, %v2041_v47 }
 0x937   : > { %v2047_v49 = vsub.f32 1.0, %v2046_v48 }
 0x939   : > { %v2049_v51 = vsub.f32 0.0, %v2047_v49 }
 0x93b   : > { %v2050_v52 = vsel %vm2048_vm6, %v2047_v49, %v2049_v51 }
 0x93c   : > { %v2051_v55 = vadd.f32 1.0, %v2050_v52 }
 0x93e   : > { %v2052_v54 = vmul.f32 %v2051_v55, %v2027_v53 }
 0x940   : > { %v2053_v56 = vpack.c.bf16 %v2052_v54, %v2052_v54 }
 0x942   : > { %2452 = vmatmul.mubr.bf16.vlgmr.msra.gmra.mxu1 %v2053_v56 }
 0xa02   : > { %v2159_v31 = vpop.f32.mrf.mxu1 }
 0xa03   : > { %v2160_v32 = vadd.f32 %v2294_v57, %v2159_v31 }
 0xa04   : > { %v2453_v59 = vpop.f32.mrf.mxu1 }
 0xa05   : > { %v2165_v60 = vadd.f32 %v2160_v32, %v3060_v58 }
 0xa06   : > { %v2162_v61 = vpop.f32.mrf.mxu1 }
 0xa07   : > { %2166 = vst.msk [vmem:[%s554_s24] sm:$0xff] %vm563_vm0, %v2165_v60 }
 0xa08   : > { %v2454_v62 = vpop.f32.mrf.mxu1 }
 0xa09   : > { %2599 = shalt.err (!%p2596_p0)
}
 0xa0a   : > { %s2600_s26 = scalar_lea.hbm %s3117_s21, 128  ;;  %s2604_s24 = scalar_lea.hbm %s3176_s17, 256 }
 0xa0b   : > { %p2601_p1 = scmp.ne.s32.totalorder %s3117_s21, %s2600_s26  ;;  %p2605_p4 = scmp.lt.s32.totalorder %s3117_s21, %s3176_s17 }
 0xa0c   : > { %p2606_p7 = scmp.lt.s32.totalorder %s2604_s24, %s2600_s26 }
 0xa0d   : > { %p2602_p2 = pnand %p2601_p1, %p2795_p5 }
 0xa0e   : > { %p2607_p8 = por %p2606_p7, %p2605_p4 }
 0xa0f   : > { %p2603_p3 = pneg %p2602_p2 }
 0xa11   : > { %p2608_p6 = pnand %p2607_p8, %p2603_p3 }
 0xa13   : > { %2611 = shalt.err (!%p2608_p6)
}
 0xa14   : > { %2459 = dma.vmem_to_hbm [thread:$0]  (%p2795_p5), %s3119_s27, 128, %s3117_s21, %s2168_s28  }
 0xa15 PF: > { %s3196_s23 = sld [smem:[#allocation10_spill]] }
 0xa16   : > { %s3197_s30 = sld [smem:[#allocation8_spill]] }
 0xa17   : > { %s3198_s22 = sld [smem:[#allocation13_spill]] }
 0xa1b   : > { %p2471_p9 = scmp.ge.s32.totalorder %s3196_s23, 2 }
 0xa1c   : > { %s2193_s29 = sand.u32 1, %s3197_s30  }
 0xa1d   : > { %p3199_p10 = scmp.ne.s32.totalorder %s3198_s22, 0  ;;  %s2194_s18 = scalar_lea.sflag [#allocation4], %s2193_s29 }
 0xa1f   : > { %p2466_p11 = pnand %p2471_p9, %p3199_p10 }
 0xa21   : > { %p2467_p12 = pneg %p2466_p11 }
 0xa23   : > { %2633 = dma.done.wait (%p2467_p12), %s2194_s18, 128  }
 0xa24   : > { %2635 = vsyncadd (%p2467_p12), %s2194_s18, 4294967168  ;;  %s3200_s27 = sld [smem:[#allocation11_spill]]  ;;  %s3203_s24 = smov %s2642_s25 }
 0xa25   : > { %s3201_s26 = sld [smem:[#allocation9_spill]] }
 0xa26   : > { %s3202_s19 = sld [smem:[#allocation12_spill]] }
 0xa2a   : > { %p28_p13 = scmp.ge.s32.totalorder %s3200_s27, 4  }
 0xa2b   : > { %s3204_s25 = smov %s3201_s26 }
 0xa2c   : > { %s3205_s26 = smov %s3202_s19  ;;  %30 = sbr.rel (!%p28_p13) target bundleno = 7 (0x7), region = 128 }
 0xa31   :  { %2199 = vsyncpa [#allocation3], 1 }
 0xa32   :  { %2201 = vsyncpa [#allocation3 + $0x1], 1 }
 0xa33   :  { %2202 = vsyncpa [#allocation4], 1 }
 0xa34   :  { %2204 = vsyncpa [#allocation4 + $0x1], 1 }

</bundles_post_ra>
